<compile_context>
chip_gen: v5e
topology: v5e:2x2
jax: 0.10.0
libtpu: 0.0.40
codegen_flags: <defaults>
</compile_context>

<pallas_src>
import functools
import math

import jax
import jax.numpy as jnp
from jax.experimental import pallas as pl
from jax.experimental.pallas import tpu as pltpu

LN_EPS = 1e-12  # BertConfig layer_norm_eps default

# Rows of the packed per-layer vector array (L, 10, I):
_BQ, _BK, _BV, _BO, _LN1G, _LN1B, _B1, _B2, _LN2G, _LN2B = range(10)


def _layernorm(x, gamma, beta):
    mu = jnp.mean(x, axis=-1, keepdims=True)
    var = jnp.mean(jnp.square(x - mu), axis=-1, keepdims=True)
    return (x - mu) * jax.lax.rsqrt(var + LN_EPS) * gamma + beta


# ------------------------------ fused kernel ---------------------------------

def _fused_encoder_kernel(num_heads,
                          x_emb_ref, mask_ref, embln_ref,
                          wq_ref, wk_ref, wv_ref, wo_ref, w1_ref, w2_ref,
                          vec_ref, mlpw_ref, mlpb_ref,
                          cls_ref, head_ref,
                          x_vmem, ctx_vmem):
    """grid = (batch_block, layer). One (TB, S, H) activation block per step."""
    l = pl.program_id(1)
    n_layers = pl.num_programs(1)

    TB, S, H = x_vmem.shape
    dh = H // num_heads
    scale = 1.0 / math.sqrt(dh)
    cdt = wq_ref.dtype  # bf16 matmul operands, f32 accumulation / LN / softmax

    # ---- layer 0: embedding LayerNorm into the resident activation scratch.
    @pl.when(l == 0)
    def _():
        x_vmem[...] = _layernorm(x_emb_ref[...].astype(jnp.float32),
                                 embln_ref[0:1, :], embln_ref[1:2, :])

    # Packed per-layer small vectors (one DMA): (10, I) f32.
    vec = vec_ref[0]
    bq = vec[_BQ:_BQ + 1, :H]
    bk = vec[_BK:_BK + 1, :H]
    bv = vec[_BV:_BV + 1, :H]
    bo = vec[_BO:_BO + 1, :H]
    ln1g = vec[_LN1G:_LN1G + 1, :H]
    ln1b = vec[_LN1B:_LN1B + 1, :H]
    b1 = vec[_B1:_B1 + 1, :]
    b2 = vec[_B2:_B2 + 1, :H]
    ln2g = vec[_LN2G:_LN2G + 1, :H]
    ln2b = vec[_LN2B:_LN2B + 1, :H]

    x = x_vmem[...]                       # (TB, S, H) f32, resident
    xf = x.reshape(TB * S, H)
    xc = xf.astype(cdt)
    mask = mask_ref[...]                  # (TB, 1, S) additive attention mask

    # ---- self-attention: whole-(TB*S) projections on the MXU.
    q = ((jnp.dot(xc, wq_ref[0], preferred_element_type=jnp.float32) + bq)
         * scale).astype(cdt)
    k = (jnp.dot(xc, wk_ref[0], preferred_element_type=jnp.float32)
         + bk).astype(cdt)
    v = (jnp.dot(xc, wv_ref[0], preferred_element_type=jnp.float32)
         + bv).astype(cdt)
    q3 = q.reshape(TB, S, H)
    k3 = k.reshape(TB, S, H)
    v3 = v.reshape(TB, S, H)

    # Per-head softmax (per-sequence, batched over TB); contexts are written
    # into lane slices of ctx_vmem so the output projection runs once at full
    # K = H contraction depth.  Head count is small -> static unroll; each
    # head's (TB,S,S) prob tile dies at the ctx store.
    for h in range(num_heads):
        sl = slice(h * dh, (h + 1) * dh)
        s = jnp.einsum('bqd,bkd->bqk', q3[:, :, sl], k3[:, :, sl],
                       preferred_element_type=jnp.float32)
        s = s + mask                                    # (TB,S,S)+(TB,1,S)
        s = s - jnp.max(s, axis=-1, keepdims=True)      # stable softmax
        p = jnp.exp(s)
        p = p * pl.reciprocal(jnp.sum(p, axis=-1, keepdims=True), approx=True)
        ctx_h = jnp.einsum('bqk,bkd->bqd', p.astype(cdt), v3[:, :, sl],
                           preferred_element_type=jnp.float32)
        ctx_vmem[:, sl] = ctx_h.reshape(TB * S, dh).astype(cdt)

    attn = jnp.dot(ctx_vmem[...], wo_ref[0],
                   preferred_element_type=jnp.float32) + bo
    # hidden_dropout_prob = 0.0 -> identity
    h1 = _layernorm(xf + attn, ln1g, ln1b)

    # ---- FFN
    inter = jnp.dot(h1.astype(cdt), w1_ref[0],
                    preferred_element_type=jnp.float32) + b1
    inter = jax.nn.gelu(inter, approximate=True)
    ffn = jnp.dot(inter.astype(cdt), w2_ref[0],
                  preferred_element_type=jnp.float32) + b2
    x_vmem[...] = _layernorm(h1 + ffn, ln2g, ln2b).reshape(TB, S, H)

    # ---- last layer: emit only the CLS rows + fused MLP (dense + tanh) head.
    @pl.when(l == n_layers - 1)
    def _():
        cls3 = x_vmem[:, 0:1, :]          # last_hidden_state[:, 0] -> (TB,1,H)
        cls_ref[...] = cls3
        cls = cls3.reshape(TB, H)
        pooled = jnp.tanh(
            jnp.dot(cls.astype(cdt), mlpw_ref[...],
                    preferred_element_type=jnp.float32) + mlpb_ref[...])
        head_ref[...] = pooled.reshape(TB, 1, H)


# ------------------------------ model wrapper ---------------------------------

def simcse_forward(params, input_ids, attention_mask, token_type_ids=None,
                   is_train=True, batch_block=None):
    """SimcseModelUnsup.forward with pooling='cls'."""
    B, S = input_ids.shape
    H = params['word_emb'].shape[-1]
    L = params['wq'].shape[0]
    I = params['w1'].shape[-1]
    num_heads = params['num_heads']

    # Batch block size: amortizes per-layer weight DMA and fattens the MXU
    # M-dim.  (On v7x pick tb so B//tb is even to keep both TCs fed, and small
    # enough that 2x weight double-buffer + activations fit 64 MiB VMEM.)
    if batch_block is None:
        batch_block = max(d for d in (8, 4, 2, 1) if B % d == 0)
    tb = batch_block
    assert B % tb == 0, "batch must be divisible by the batch block size"

    if token_type_ids is None:
        token_type_ids = jnp.zeros_like(input_ids)

    # Embedding gather (plain JAX glue, overlapped with the kernel by XLA);
    # fed to the kernel in bf16 to halve the (B,S,H) HBM read.
    emb = (params['word_emb'][input_ids]
           + params['pos_emb'][:S][None, :, :]
           + params['type_emb'][token_type_ids]).astype(jnp.bfloat16)

    # Additive attention mask (B, 1, S)
    add_mask = ((1.0 - attention_mask.astype(jnp.float32)) * -1e9)[:, None, :]

    per_batch = lambda shape: pl.BlockSpec(shape, lambda b, l: (b, 0, 0))
    per_layer = lambda shape: pl.BlockSpec(shape, lambda b, l: (l, 0, 0))
    const2d = lambda shape: pl.BlockSpec(shape, lambda b, l: (0, 0))

    in_specs = [
        per_batch((tb, S, H)),                        # summed embeddings (bf16)
        per_batch((tb, 1, S)),                        # additive mask
        const2d((2, H)),                              # embedding LN gamma/beta
        per_layer((1, H, H)),                         # wq
        per_layer((1, H, H)),                         # wk
        per_layer((1, H, H)),                         # wv
        per_layer((1, H, H)),                         # wo
        per_layer((1, H, I)),                         # w1
        per_layer((1, I, H)),                         # w2
        per_layer((1, 10, I)),                        # packed per-layer vectors
        const2d((H, H)), const2d((1, H)),             # MLP head dense + bias
    ]
    out_specs = [
        per_batch((tb, 1, H)),                        # raw CLS (is_train=False)
        per_batch((tb, 1, H)),                        # MLP head output
    ]
    out_shape = (jax.ShapeDtypeStruct((B, 1, H), jnp.float32),
                 jax.ShapeDtypeStruct((B, 1, H), jnp.float32))

    args = (emb, add_mask, params['emb_ln'],
            params['wq'], params['wk'], params['wv'], params['wo'],
            params['w1'], params['w2'], params['layer_vec'],
            params['mlp_w'], params['mlp_b'])

    # ---- VMEM budget (explicit, so real BERT-base sizes compile cleanly).
    w_bytes = (4 * H * H + 2 * H * I) * 2            # per-layer bf16 weights
    vec_bytes = 10 * I * 4
    fixed_bytes = 2 * H * 4 + H * H * 2 + H * 4      # emb_ln + MLP head
    io_bytes = tb * S * H * 2 + tb * S * 4 + 2 * tb * H * 4
    scratch_bytes = tb * S * H * 4 + tb * S * H * 2  # x_vmem + ctx
    act_bytes = (3 * tb * S * H * 4                  # q/k/v f32 temporaries
                 + tb * S * I * 4                    # FFN intermediate
                 + 3 * tb * S * S * 4                # score/prob tiles
                 + 2 * tb * S * H * 4)               # residual temporaries
    vmem_limit = int(min(100 << 20,
                         2 * (w_bytes + vec_bytes + fixed_bytes + io_bytes)
                         + scratch_bytes + act_bytes + (4 << 20)))

    # ---- advisory cost estimate (weights really are re-read B//tb times).
    flops = int(B * S * L * (8 * H * H + 4 * H * I + 4 * S * H) + 2 * B * H * H)
    transcendentals = int(B * L * (num_heads * S * S + S * I) + B * H)
    bytes_accessed = int((B // tb) * L * (w_bytes + vec_bytes)
                         + (B // tb) * L * fixed_bytes
                         + B * S * H * 2 + B * S * 4 + 2 * B * H * 4)

    cls_raw, pooled = pl.pallas_call(
        functools.partial(_fused_encoder_kernel, num_heads),
        out_shape=out_shape,
        grid_spec=pltpu.PrefetchScalarGridSpec(
            num_scalar_prefetch=0,
            grid=(B // tb, L),
            in_specs=in_specs,
            out_specs=out_specs,
            scratch_shapes=[pltpu.VMEM((tb, S, H), jnp.float32),
                            pltpu.VMEM((tb * S, H), jnp.bfloat16)]),
        compiler_params=pltpu.CompilerParams(
            dimension_semantics=("parallel", "arbitrary"),
            vmem_limit_bytes=vmem_limit),
        cost_estimate=pl.CostEstimate(flops=flops,
                                      transcendentals=transcendentals,
                                      bytes_accessed=bytes_accessed),
    )(*args)

    if is_train:
        return pooled[:, 0, :]
    return cls_raw[:, 0, :]


# ------------------------------ params ----------------------------------------

def init_params(key, vocab=50, max_pos=16, type_vocab=2, H=32, I=64,
                num_layers=2, num_heads=2, weight_dtype=jnp.bfloat16):
    std = 0.02
    keys = iter(jax.random.split(key, 16 + num_layers * 8))

    def nrm(shape, dtype=jnp.float32):
        return (std * jax.random.normal(next(keys), shape)).astype(dtype)

    # Packed per-layer small vectors: (L, 10, I) f32.
    # rows: bq,bk,bv,bo,ln1_g,ln1_b,b1,b2,ln2_g,ln2_b  (biases 0, LN gammas 1)
    layer_vec = jnp.zeros((num_layers, 10, I), jnp.float32)
    layer_vec = layer_vec.at[:, _LN1G, :].set(1.0)
    layer_vec = layer_vec.at[:, _LN2G, :].set(1.0)

    emb_ln = jnp.concatenate([jnp.ones((1, H), jnp.float32),
                              jnp.zeros((1, H), jnp.float32)], axis=0)

    params = {
        'num_heads': num_heads,
        'word_emb': nrm((vocab, H)),
        'pos_emb': nrm((max_pos, H)),
        'type_emb': nrm((type_vocab, H)),
        'emb_ln': emb_ln,                                   # (2, H): gamma;beta
        # Per-layer matmul weights stacked on [L] and streamed in bf16.
        'wq': nrm((num_layers, H, H), weight_dtype),
        'wk': nrm((num_layers, H, H), weight_dtype),
        'wv': nrm((num_layers, H, H), weight_dtype),
        'wo': nrm((num_layers, H, H), weight_dtype),
        'w1': nrm((num_layers, H, I), weight_dtype),
        'w2': nrm((num_layers, I, H), weight_dtype),
        'layer_vec': layer_vec,                             # (L, 10, I) f32
        'mlp_w': nrm((H, H), weight_dtype),
        'mlp_b': jnp.zeros((1, H), jnp.float32),
    }
    return params


if __name__ == "__main__":
    B, S, H = 2, 8, 32
    key = jax.random.PRNGKey(0)
    k_param, k_ids = jax.random.split(key)

    params = init_params(k_param, H=H, I=2 * H, num_layers=2, num_heads=2)

    input_ids = jax.random.randint(k_ids, (B, S), 0, 50, dtype=jnp.int32)
    attention_mask = jnp.ones((B, S), jnp.int32).at[1, S - 2:].set(0)

    out = simcse_forward(params, input_ids, attention_mask, is_train=True)
    out = jax.block_until_ready(out)
    assert out.shape == (B, H) and out.dtype == jnp.float32
    print("KERNEL_OK")
</pallas_src>

<mosaic_0001>
module attributes {stable_mosaic.version = 11 : i64} {
  func.func @_fused_encoder_kernel(%arg0: i32, %arg1: i32, %arg2: memref<2x8x32xbf16, #tpu.memory_space<vmem>>, %arg3: memref<2x1x8xf32, #tpu.memory_space<vmem>>, %arg4: memref<2x32xf32, #tpu.memory_space<vmem>>, %arg5: memref<1x32x32xbf16, #tpu.memory_space<vmem>>, %arg6: memref<1x32x32xbf16, #tpu.memory_space<vmem>>, %arg7: memref<1x32x32xbf16, #tpu.memory_space<vmem>>, %arg8: memref<1x32x32xbf16, #tpu.memory_space<vmem>>, %arg9: memref<1x32x64xbf16, #tpu.memory_space<vmem>>, %arg10: memref<1x64x32xbf16, #tpu.memory_space<vmem>>, %arg11: memref<1x10x64xf32, #tpu.memory_space<vmem>>, %arg12: memref<32x32xbf16, #tpu.memory_space<vmem>>, %arg13: memref<1x32xf32, #tpu.memory_space<vmem>>, %arg14: memref<2x1x32xf32, #tpu.memory_space<vmem>>, %arg15: memref<2x1x32xf32, #tpu.memory_space<vmem>>, %arg16: memref<2x8x32xf32, #tpu.memory_space<vmem>>, %arg17: memref<16x32xbf16, #tpu.memory_space<vmem>>) attributes {dimension_semantics = [#tpu.dimension_semantics<parallel>, #tpu.dimension_semantics<arbitrary>], iteration_bounds = array<i64: 1, 2>, scalar_prefetch = 0 : i64, scratch_operands = 2 : i64, tpu.core_type = #tpu.core_type<tc>, window_params = [{transform_indices = @transform_0, window_bounds = array<i64: 2, 8, 32>}, {transform_indices = @transform_1, window_bounds = array<i64: 2, 1, 8>}, {pipeline_mode = #tpu.pipeline_mode<synchronous>, transform_indices = @transform_2, window_bounds = array<i64: 2, 32>}, {transform_indices = @transform_3, window_bounds = array<i64: 1, 32, 32>}, {transform_indices = @transform_4, window_bounds = array<i64: 1, 32, 32>}, {transform_indices = @transform_5, window_bounds = array<i64: 1, 32, 32>}, {transform_indices = @transform_6, window_bounds = array<i64: 1, 32, 32>}, {transform_indices = @transform_7, window_bounds = array<i64: 1, 32, 64>}, {transform_indices = @transform_8, window_bounds = array<i64: 1, 64, 32>}, {transform_indices = @transform_9, window_bounds = array<i64: 1, 10, 64>}, {pipeline_mode = #tpu.pipeline_mode<synchronous>, transform_indices = @transform_10, window_bounds = array<i64: 32, 32>}, {pipeline_mode = #tpu.pipeline_mode<synchronous>, transform_indices = @transform_11, window_bounds = array<i64: 1, 32>}, {transform_indices = @transform_12, window_bounds = array<i64: 2, 1, 32>}, {transform_indices = @transform_13, window_bounds = array<i64: 2, 1, 32>}]} {
    %c0_i32 = arith.constant 0 : i32
    %0 = arith.cmpi eq, %arg1, %c0_i32 : i32
    %1 = arith.extui %0 : i1 to i32
    %c0_i32_0 = arith.constant 0 : i32
    %2 = arith.cmpi ne, %1, %c0_i32_0 : i32
    scf.if %2 {
      %c0_64 = arith.constant 0 : index
      %c0_65 = arith.constant 0 : index
      %c0_66 = arith.constant 0 : index
      %166 = vector.load %arg2[%c0_64, %c0_65, %c0_66] : memref<2x8x32xbf16, #tpu.memory_space<vmem>>, vector<2x8x32xbf16>
      %167 = arith.extf %166 : vector<2x8x32xbf16> to vector<2x8x32xf32>
      %c0_67 = arith.constant 0 : index
      %c0_68 = arith.constant 0 : index
      %168 = vector.load %arg4[%c0_67, %c0_68] : memref<2x32xf32, #tpu.memory_space<vmem>>, vector<1x32xf32>
      %c1 = arith.constant 1 : index
      %c0_69 = arith.constant 0 : index
      %169 = vector.load %arg4[%c1, %c0_69] : memref<2x32xf32, #tpu.memory_space<vmem>>, vector<1x32xf32>
      %cst_70 = arith.constant dense<0.000000e+00> : vector<2x8xf32>
      %170 = vector.multi_reduction <add>, %167, %cst_70 [2] : vector<2x8x32xf32> to vector<2x8xf32>
      %171 = vector.shape_cast %170 : vector<2x8xf32> to vector<2x8x1xf32>
      %cst_71 = arith.constant 3.200000e+01 : f32
      %172 = vector.broadcast %cst_71 : f32 to vector<2x8x1xf32>
      %173 = arith.divf %171, %172 : vector<2x8x1xf32>
      %174 = vector.broadcast %173 : vector<2x8x1xf32> to vector<2x8x32xf32>
      %175 = arith.subf %167, %174 : vector<2x8x32xf32>
      %176 = arith.mulf %175, %175 : vector<2x8x32xf32>
      %cst_72 = arith.constant dense<0.000000e+00> : vector<2x8xf32>
      %177 = vector.multi_reduction <add>, %176, %cst_72 [2] : vector<2x8x32xf32> to vector<2x8xf32>
      %178 = vector.shape_cast %177 : vector<2x8xf32> to vector<2x8x1xf32>
      %cst_73 = arith.constant 3.200000e+01 : f32
      %179 = vector.broadcast %cst_73 : f32 to vector<2x8x1xf32>
      %180 = arith.divf %178, %179 : vector<2x8x1xf32>
      %181 = vector.broadcast %173 : vector<2x8x1xf32> to vector<2x8x32xf32>
      %182 = arith.subf %167, %181 : vector<2x8x32xf32>
      %cst_74 = arith.constant 9.99999996E-13 : f32
      %183 = vector.broadcast %cst_74 : f32 to vector<2x8x1xf32>
      %184 = arith.addf %180, %183 : vector<2x8x1xf32>
      %185 = math.rsqrt %184 : vector<2x8x1xf32>
      %186 = vector.broadcast %185 : vector<2x8x1xf32> to vector<2x8x32xf32>
      %187 = arith.mulf %182, %186 : vector<2x8x32xf32>
      %188 = vector.shape_cast %168 : vector<1x32xf32> to vector<1x1x32xf32>
      %189 = vector.broadcast %188 : vector<1x1x32xf32> to vector<2x8x32xf32>
      %190 = arith.mulf %187, %189 : vector<2x8x32xf32>
      %191 = vector.shape_cast %169 : vector<1x32xf32> to vector<1x1x32xf32>
      %192 = vector.broadcast %191 : vector<1x1x32xf32> to vector<2x8x32xf32>
      %193 = arith.addf %190, %192 : vector<2x8x32xf32>
      %c0_75 = arith.constant 0 : index
      %c0_76 = arith.constant 0 : index
      %c0_77 = arith.constant 0 : index
      %194 = vector.load %arg16[%c0_75, %c0_76, %c0_77] : memref<2x8x32xf32, #tpu.memory_space<vmem>>, vector<2x8x32xf32>
      tpu.vector_store %arg16[%c0_75, %c0_76, %c0_77], %193 {strides = array<i32>} : memref<2x8x32xf32, #tpu.memory_space<vmem>>, vector<2x8x32xf32>,
    } else {
    }
    %c0 = arith.constant 0 : index
    %c0_1 = arith.constant 0 : index
    %c0_2 = arith.constant 0 : index
    %3 = vector.load %arg11[%c0, %c0_1, %c0_2] : memref<1x10x64xf32, #tpu.memory_space<vmem>>, vector<1x10x64xf32>
    %4 = vector.shape_cast %3 : vector<1x10x64xf32> to vector<10x64xf32>
    %5 = vector.extract_strided_slice %4 {offsets = [0, 0], sizes = [1, 32], strides = [1, 1]} : vector<10x64xf32> to vector<1x32xf32>
    %6 = vector.extract_strided_slice %4 {offsets = [1, 0], sizes = [1, 32], strides = [1, 1]} : vector<10x64xf32> to vector<1x32xf32>
    %7 = vector.extract_strided_slice %4 {offsets = [2, 0], sizes = [1, 32], strides = [1, 1]} : vector<10x64xf32> to vector<1x32xf32>
    %8 = vector.extract_strided_slice %4 {offsets = [3, 0], sizes = [1, 32], strides = [1, 1]} : vector<10x64xf32> to vector<1x32xf32>
    %9 = vector.extract_strided_slice %4 {offsets = [4, 0], sizes = [1, 32], strides = [1, 1]} : vector<10x64xf32> to vector<1x32xf32>
    %10 = vector.extract_strided_slice %4 {offsets = [5, 0], sizes = [1, 32], strides = [1, 1]} : vector<10x64xf32> to vector<1x32xf32>
    %11 = vector.extract_strided_slice %4 {offsets = [6, 0], sizes = [1, 64], strides = [1, 1]} : vector<10x64xf32> to vector<1x64xf32>
    %12 = vector.extract_strided_slice %4 {offsets = [7, 0], sizes = [1, 32], strides = [1, 1]} : vector<10x64xf32> to vector<1x32xf32>
    %13 = vector.extract_strided_slice %4 {offsets = [8, 0], sizes = [1, 32], strides = [1, 1]} : vector<10x64xf32> to vector<1x32xf32>
    %14 = vector.extract_strided_slice %4 {offsets = [9, 0], sizes = [1, 32], strides = [1, 1]} : vector<10x64xf32> to vector<1x32xf32>
    %c0_3 = arith.constant 0 : index
    %c0_4 = arith.constant 0 : index
    %c0_5 = arith.constant 0 : index
    %15 = vector.load %arg16[%c0_3, %c0_4, %c0_5] : memref<2x8x32xf32, #tpu.memory_space<vmem>>, vector<2x8x32xf32>
    %16 = vector.shape_cast %15 : vector<2x8x32xf32> to vector<16x32xf32>
    %17 = arith.truncf %16 : vector<16x32xf32> to vector<16x32xbf16>
    %c0_6 = arith.constant 0 : index
    %c0_7 = arith.constant 0 : index
    %c0_8 = arith.constant 0 : index
    %18 = vector.load %arg3[%c0_6, %c0_7, %c0_8] : memref<2x1x8xf32, #tpu.memory_space<vmem>>, vector<2x1x8xf32>
    %c0_9 = arith.constant 0 : index
    %c0_10 = arith.constant 0 : index
    %c0_11 = arith.constant 0 : index
    %19 = vector.load %arg5[%c0_9, %c0_10, %c0_11] : memref<1x32x32xbf16, #tpu.memory_space<vmem>>, vector<1x32x32xbf16>
    %20 = vector.shape_cast %19 : vector<1x32x32xbf16> to vector<32x32xbf16>
    %cst = arith.constant dense<0.000000e+00> : vector<16x32xf32>
    %21 = tpu.matmul %17, %20, %cst {dimension_numbers = #tpu.dot_dimension_numbers<[1], [0], [0], [1], [0, 0, 1, 1], [], []>} : vector<16x32xbf16>, vector<32x32xbf16>, vector<16x32xf32> -> vector<16x32xf32>
    %22 = vector.broadcast %5 : vector<1x32xf32> to vector<16x32xf32>
    %23 = arith.addf %21, %22 : vector<16x32xf32>
    %cst_12 = arith.constant 2.500000e-01 : f32
    %24 = vector.broadcast %cst_12 : f32 to vector<16x32xf32>
    %25 = arith.mulf %23, %24 : vector<16x32xf32>
    %26 = arith.truncf %25 : vector<16x32xf32> to vector<16x32xbf16>
    %c0_13 = arith.constant 0 : index
    %c0_14 = arith.constant 0 : index
    %c0_15 = arith.constant 0 : index
    %27 = vector.load %arg6[%c0_13, %c0_14, %c0_15] : memref<1x32x32xbf16, #tpu.memory_space<vmem>>, vector<1x32x32xbf16>
    %28 = vector.shape_cast %27 : vector<1x32x32xbf16> to vector<32x32xbf16>
    %cst_16 = arith.constant dense<0.000000e+00> : vector<16x32xf32>
    %29 = tpu.matmul %17, %28, %cst_16 {dimension_numbers = #tpu.dot_dimension_numbers<[1], [0], [0], [1], [0, 0, 1, 1], [], []>} : vector<16x32xbf16>, vector<32x32xbf16>, vector<16x32xf32> -> vector<16x32xf32>
    %30 = vector.broadcast %6 : vector<1x32xf32> to vector<16x32xf32>
    %31 = arith.addf %29, %30 : vector<16x32xf32>
    %32 = arith.truncf %31 : vector<16x32xf32> to vector<16x32xbf16>
    %c0_17 = arith.constant 0 : index
    %c0_18 = arith.constant 0 : index
    %c0_19 = arith.constant 0 : index
    %33 = vector.load %arg7[%c0_17, %c0_18, %c0_19] : memref<1x32x32xbf16, #tpu.memory_space<vmem>>, vector<1x32x32xbf16>
    %34 = vector.shape_cast %33 : vector<1x32x32xbf16> to vector<32x32xbf16>
    %cst_20 = arith.constant dense<0.000000e+00> : vector<16x32xf32>
    %35 = tpu.matmul %17, %34, %cst_20 {dimension_numbers = #tpu.dot_dimension_numbers<[1], [0], [0], [1], [0, 0, 1, 1], [], []>} : vector<16x32xbf16>, vector<32x32xbf16>, vector<16x32xf32> -> vector<16x32xf32>
    %36 = vector.broadcast %7 : vector<1x32xf32> to vector<16x32xf32>
    %37 = arith.addf %35, %36 : vector<16x32xf32>
    %38 = arith.truncf %37 : vector<16x32xf32> to vector<16x32xbf16>
    %39 = vector.shape_cast %26 : vector<16x32xbf16> to vector<2x8x32xbf16>
    %40 = vector.shape_cast %32 : vector<16x32xbf16> to vector<2x8x32xbf16>
    %41 = vector.shape_cast %38 : vector<16x32xbf16> to vector<2x8x32xbf16>
    %42 = vector.extract_strided_slice %39 {offsets = [0, 0, 0], sizes = [2, 8, 16], strides = [1, 1, 1]} : vector<2x8x32xbf16> to vector<2x8x16xbf16>
    %43 = vector.extract_strided_slice %40 {offsets = [0, 0, 0], sizes = [2, 8, 16], strides = [1, 1, 1]} : vector<2x8x32xbf16> to vector<2x8x16xbf16>
    "tpu.trace_start"() <{level = 10 : i32, message = "bqd,bkd->bqk"}> : () -> ()
    %cst_21 = arith.constant dense<0.000000e+00> : vector<2x8x8xf32>
    %44 = tpu.matmul %42, %43, %cst_21 {dimension_numbers = #tpu.dot_dimension_numbers<[2], [2], [1], [1], [0, 0, 0, 1, 1, 1], [0], [0]>} : vector<2x8x16xbf16>, vector<2x8x16xbf16>, vector<2x8x8xf32> -> vector<2x8x8xf32>
    "tpu.trace_stop"() : () -> ()
    %45 = vector.broadcast %18 : vector<2x1x8xf32> to vector<2x8x8xf32>
    %46 = arith.addf %44, %45 : vector<2x8x8xf32>
    %cst_22 = arith.constant dense<0xFF800000> : vector<2x8xf32>
    %47 = vector.multi_reduction <maximumf>, %46, %cst_22 [2] : vector<2x8x8xf32> to vector<2x8xf32>
    %48 = vector.shape_cast %47 : vector<2x8xf32> to vector<2x8x1xf32>
    %49 = vector.broadcast %48 : vector<2x8x1xf32> to vector<2x8x8xf32>
    %50 = arith.subf %46, %49 : vector<2x8x8xf32>
    %51 = math.exp %50 : vector<2x8x8xf32>
    %cst_23 = arith.constant dense<0.000000e+00> : vector<2x8xf32>
    %52 = vector.multi_reduction <add>, %51, %cst_23 [2] : vector<2x8x8xf32> to vector<2x8xf32>
    %53 = vector.shape_cast %52 : vector<2x8xf32> to vector<2x8x1xf32>
    %54 = tpu.reciprocal %53 {approx = true} : vector<2x8x1xf32> -> vector<2x8x1xf32>
    %55 = vector.broadcast %54 : vector<2x8x1xf32> to vector<2x8x8xf32>
    %56 = arith.mulf %51, %55 : vector<2x8x8xf32>
    %57 = arith.truncf %56 : vector<2x8x8xf32> to vector<2x8x8xbf16>
    %58 = vector.extract_strided_slice %41 {offsets = [0, 0, 0], sizes = [2, 8, 16], strides = [1, 1, 1]} : vector<2x8x32xbf16> to vector<2x8x16xbf16>
    "tpu.trace_start"() <{level = 10 : i32, message = "bqk,bkd->bqd"}> : () -> ()
    %cst_24 = arith.constant dense<0.000000e+00> : vector<2x8x16xf32>
    %59 = tpu.matmul %57, %58, %cst_24 {dimension_numbers = #tpu.dot_dimension_numbers<[2], [1], [1], [2], [0, 0, 0, 1, 1, 2], [0], [0]>} : vector<2x8x8xbf16>, vector<2x8x16xbf16>, vector<2x8x16xf32> -> vector<2x8x16xf32>
    "tpu.trace_stop"() : () -> ()
    %60 = vector.shape_cast %59 : vector<2x8x16xf32> to vector<16x16xf32>
    %61 = arith.truncf %60 : vector<16x16xf32> to vector<16x16xbf16>
    %c0_25 = arith.constant 0 : index
    %c0_26 = arith.constant 0 : index
    %62 = vector.load %arg17[%c0_25, %c0_26] : memref<16x32xbf16, #tpu.memory_space<vmem>>, vector<16x16xbf16>
    tpu.vector_store %arg17[%c0_25, %c0_26], %61 {strides = array<i32>} : memref<16x32xbf16, #tpu.memory_space<vmem>>, vector<16x16xbf16>,
    %63 = vector.extract_strided_slice %39 {offsets = [0, 0, 16], sizes = [2, 8, 16], strides = [1, 1, 1]} : vector<2x8x32xbf16> to vector<2x8x16xbf16>
    %64 = vector.extract_strided_slice %40 {offsets = [0, 0, 16], sizes = [2, 8, 16], strides = [1, 1, 1]} : vector<2x8x32xbf16> to vector<2x8x16xbf16>
    "tpu.trace_start"() <{level = 10 : i32, message = "bqd,bkd->bqk"}> : () -> ()
    %cst_27 = arith.constant dense<0.000000e+00> : vector<2x8x8xf32>
    %65 = tpu.matmul %63, %64, %cst_27 {dimension_numbers = #tpu.dot_dimension_numbers<[2], [2], [1], [1], [0, 0, 0, 1, 1, 1], [0], [0]>} : vector<2x8x16xbf16>, vector<2x8x16xbf16>, vector<2x8x8xf32> -> vector<2x8x8xf32>
    "tpu.trace_stop"() : () -> ()
    %66 = vector.broadcast %18 : vector<2x1x8xf32> to vector<2x8x8xf32>
    %67 = arith.addf %65, %66 : vector<2x8x8xf32>
    %cst_28 = arith.constant dense<0xFF800000> : vector<2x8xf32>
    %68 = vector.multi_reduction <maximumf>, %67, %cst_28 [2] : vector<2x8x8xf32> to vector<2x8xf32>
    %69 = vector.shape_cast %68 : vector<2x8xf32> to vector<2x8x1xf32>
    %70 = vector.broadcast %69 : vector<2x8x1xf32> to vector<2x8x8xf32>
    %71 = arith.subf %67, %70 : vector<2x8x8xf32>
    %72 = math.exp %71 : vector<2x8x8xf32>
    %cst_29 = arith.constant dense<0.000000e+00> : vector<2x8xf32>
    %73 = vector.multi_reduction <add>, %72, %cst_29 [2] : vector<2x8x8xf32> to vector<2x8xf32>
    %74 = vector.shape_cast %73 : vector<2x8xf32> to vector<2x8x1xf32>
    %75 = tpu.reciprocal %74 {approx = true} : vector<2x8x1xf32> -> vector<2x8x1xf32>
    %76 = vector.broadcast %75 : vector<2x8x1xf32> to vector<2x8x8xf32>
    %77 = arith.mulf %72, %76 : vector<2x8x8xf32>
    %78 = arith.truncf %77 : vector<2x8x8xf32> to vector<2x8x8xbf16>
    %79 = vector.extract_strided_slice %41 {offsets = [0, 0, 16], sizes = [2, 8, 16], strides = [1, 1, 1]} : vector<2x8x32xbf16> to vector<2x8x16xbf16>
    "tpu.trace_start"() <{level = 10 : i32, message = "bqk,bkd->bqd"}> : () -> ()
    %cst_30 = arith.constant dense<0.000000e+00> : vector<2x8x16xf32>
    %80 = tpu.matmul %78, %79, %cst_30 {dimension_numbers = #tpu.dot_dimension_numbers<[2], [1], [1], [2], [0, 0, 0, 1, 1, 2], [0], [0]>} : vector<2x8x8xbf16>, vector<2x8x16xbf16>, vector<2x8x16xf32> -> vector<2x8x16xf32>
    "tpu.trace_stop"() : () -> ()
    %81 = vector.shape_cast %80 : vector<2x8x16xf32> to vector<16x16xf32>
    %82 = arith.truncf %81 : vector<16x16xf32> to vector<16x16xbf16>
    %c0_31 = arith.constant 0 : index
    %c16 = arith.constant 16 : index
    %83 = vector.load %arg17[%c0_31, %c16] : memref<16x32xbf16, #tpu.memory_space<vmem>>, vector<16x16xbf16>
    tpu.vector_store %arg17[%c0_31, %c16], %82 {strides = array<i32>} : memref<16x32xbf16, #tpu.memory_space<vmem>>, vector<16x16xbf16>,
    %c0_32 = arith.constant 0 : index
    %c0_33 = arith.constant 0 : index
    %84 = vector.load %arg17[%c0_32, %c0_33] : memref<16x32xbf16, #tpu.memory_space<vmem>>, vector<16x32xbf16>
    %c0_34 = arith.constant 0 : index
    %c0_35 = arith.constant 0 : index
    %c0_36 = arith.constant 0 : index
    %85 = vector.load %arg8[%c0_34, %c0_35, %c0_36] : memref<1x32x32xbf16, #tpu.memory_space<vmem>>, vector<1x32x32xbf16>
    %86 = vector.shape_cast %85 : vector<1x32x32xbf16> to vector<32x32xbf16>
    %cst_37 = arith.constant dense<0.000000e+00> : vector<16x32xf32>
    %87 = tpu.matmul %84, %86, %cst_37 {dimension_numbers = #tpu.dot_dimension_numbers<[1], [0], [0], [1], [0, 0, 1, 1], [], []>} : vector<16x32xbf16>, vector<32x32xbf16>, vector<16x32xf32> -> vector<16x32xf32>
    %88 = vector.broadcast %8 : vector<1x32xf32> to vector<16x32xf32>
    %89 = arith.addf %87, %88 : vector<16x32xf32>
    %90 = arith.addf %16, %89 : vector<16x32xf32>
    %cst_38 = arith.constant dense<0.000000e+00> : vector<16xf32>
    %91 = vector.multi_reduction <add>, %90, %cst_38 [1] : vector<16x32xf32> to vector<16xf32>
    %92 = vector.shape_cast %91 : vector<16xf32> to vector<16x1xf32>
    %cst_39 = arith.constant 3.200000e+01 : f32
    %93 = vector.broadcast %cst_39 : f32 to vector<16x1xf32>
    %94 = arith.divf %92, %93 : vector<16x1xf32>
    %95 = vector.broadcast %94 : vector<16x1xf32> to vector<16x32xf32>
    %96 = arith.subf %90, %95 : vector<16x32xf32>
    %97 = arith.mulf %96, %96 : vector<16x32xf32>
    %cst_40 = arith.constant dense<0.000000e+00> : vector<16xf32>
    %98 = vector.multi_reduction <add>, %97, %cst_40 [1] : vector<16x32xf32> to vector<16xf32>
    %99 = vector.shape_cast %98 : vector<16xf32> to vector<16x1xf32>
    %cst_41 = arith.constant 3.200000e+01 : f32
    %100 = vector.broadcast %cst_41 : f32 to vector<16x1xf32>
    %101 = arith.divf %99, %100 : vector<16x1xf32>
    %102 = vector.broadcast %94 : vector<16x1xf32> to vector<16x32xf32>
    %103 = arith.subf %90, %102 : vector<16x32xf32>
    %cst_42 = arith.constant 9.99999996E-13 : f32
    %104 = vector.broadcast %cst_42 : f32 to vector<16x1xf32>
    %105 = arith.addf %101, %104 : vector<16x1xf32>
    %106 = math.rsqrt %105 : vector<16x1xf32>
    %107 = vector.broadcast %106 : vector<16x1xf32> to vector<16x32xf32>
    %108 = arith.mulf %103, %107 : vector<16x32xf32>
    %109 = vector.broadcast %9 : vector<1x32xf32> to vector<16x32xf32>
    %110 = arith.mulf %108, %109 : vector<16x32xf32>
    %111 = vector.broadcast %10 : vector<1x32xf32> to vector<16x32xf32>
    %112 = arith.addf %110, %111 : vector<16x32xf32>
    %113 = arith.truncf %112 : vector<16x32xf32> to vector<16x32xbf16>
    %c0_43 = arith.constant 0 : index
    %c0_44 = arith.constant 0 : index
    %c0_45 = arith.constant 0 : index
    %114 = vector.load %arg9[%c0_43, %c0_44, %c0_45] : memref<1x32x64xbf16, #tpu.memory_space<vmem>>, vector<1x32x64xbf16>
    %115 = vector.shape_cast %114 : vector<1x32x64xbf16> to vector<32x64xbf16>
    %cst_46 = arith.constant dense<0.000000e+00> : vector<16x64xf32>
    %116 = tpu.matmul %113, %115, %cst_46 {dimension_numbers = #tpu.dot_dimension_numbers<[1], [0], [0], [1], [0, 0, 1, 1], [], []>} : vector<16x32xbf16>, vector<32x64xbf16>, vector<16x64xf32> -> vector<16x64xf32>
    %117 = vector.broadcast %11 : vector<1x64xf32> to vector<16x64xf32>
    %118 = arith.addf %116, %117 : vector<16x64xf32>
    %119 = arith.mulf %118, %118 : vector<16x64xf32>
    %120 = arith.mulf %118, %119 : vector<16x64xf32>
    %cst_47 = arith.constant 4.471500e-02 : f32
    %121 = vector.broadcast %cst_47 : f32 to vector<16x64xf32>
    %122 = arith.mulf %121, %120 : vector<16x64xf32>
    %123 = arith.addf %118, %122 : vector<16x64xf32>
    %cst_48 = arith.constant 0.797884583 : f32
    %124 = vector.broadcast %cst_48 : f32 to vector<16x64xf32>
    %125 = arith.mulf %124, %123 : vector<16x64xf32>
    %126 = math.tanh %125 : vector<16x64xf32>
    %cst_49 = arith.constant 1.000000e+00 : f32
    %127 = vector.broadcast %cst_49 : f32 to vector<16x64xf32>
    %128 = arith.addf %127, %126 : vector<16x64xf32>
    %cst_50 = arith.constant 5.000000e-01 : f32
    %129 = vector.broadcast %cst_50 : f32 to vector<16x64xf32>
    %130 = arith.mulf %129, %128 : vector<16x64xf32>
    %131 = arith.mulf %118, %130 : vector<16x64xf32>
    %132 = arith.truncf %131 : vector<16x64xf32> to vector<16x64xbf16>
    %c0_51 = arith.constant 0 : index
    %c0_52 = arith.constant 0 : index
    %c0_53 = arith.constant 0 : index
    %133 = vector.load %arg10[%c0_51, %c0_52, %c0_53] : memref<1x64x32xbf16, #tpu.memory_space<vmem>>, vector<1x64x32xbf16>
    %134 = vector.shape_cast %133 : vector<1x64x32xbf16> to vector<64x32xbf16>
    %cst_54 = arith.constant dense<0.000000e+00> : vector<16x32xf32>
    %135 = tpu.matmul %132, %134, %cst_54 {dimension_numbers = #tpu.dot_dimension_numbers<[1], [0], [0], [1], [0, 0, 1, 1], [], []>} : vector<16x64xbf16>, vector<64x32xbf16>, vector<16x32xf32> -> vector<16x32xf32>
    %136 = vector.broadcast %12 : vector<1x32xf32> to vector<16x32xf32>
    %137 = arith.addf %135, %136 : vector<16x32xf32>
    %138 = arith.addf %112, %137 : vector<16x32xf32>
    %cst_55 = arith.constant dense<0.000000e+00> : vector<16xf32>
    %139 = vector.multi_reduction <add>, %138, %cst_55 [1] : vector<16x32xf32> to vector<16xf32>
    %140 = vector.shape_cast %139 : vector<16xf32> to vector<16x1xf32>
    %cst_56 = arith.constant 3.200000e+01 : f32
    %141 = vector.broadcast %cst_56 : f32 to vector<16x1xf32>
    %142 = arith.divf %140, %141 : vector<16x1xf32>
    %143 = vector.broadcast %142 : vector<16x1xf32> to vector<16x32xf32>
    %144 = arith.subf %138, %143 : vector<16x32xf32>
    %145 = arith.mulf %144, %144 : vector<16x32xf32>
    %cst_57 = arith.constant dense<0.000000e+00> : vector<16xf32>
    %146 = vector.multi_reduction <add>, %145, %cst_57 [1] : vector<16x32xf32> to vector<16xf32>
    %147 = vector.shape_cast %146 : vector<16xf32> to vector<16x1xf32>
    %cst_58 = arith.constant 3.200000e+01 : f32
    %148 = vector.broadcast %cst_58 : f32 to vector<16x1xf32>
    %149 = arith.divf %147, %148 : vector<16x1xf32>
    %150 = vector.broadcast %142 : vector<16x1xf32> to vector<16x32xf32>
    %151 = arith.subf %138, %150 : vector<16x32xf32>
    %cst_59 = arith.constant 9.99999996E-13 : f32
    %152 = vector.broadcast %cst_59 : f32 to vector<16x1xf32>
    %153 = arith.addf %149, %152 : vector<16x1xf32>
    %154 = math.rsqrt %153 : vector<16x1xf32>
    %155 = vector.broadcast %154 : vector<16x1xf32> to vector<16x32xf32>
    %156 = arith.mulf %151, %155 : vector<16x32xf32>
    %157 = vector.broadcast %13 : vector<1x32xf32> to vector<16x32xf32>
    %158 = arith.mulf %156, %157 : vector<16x32xf32>
    %159 = vector.broadcast %14 : vector<1x32xf32> to vector<16x32xf32>
    %160 = arith.addf %158, %159 : vector<16x32xf32>
    %161 = vector.shape_cast %160 : vector<16x32xf32> to vector<2x8x32xf32>
    %c0_60 = arith.constant 0 : index
    %c0_61 = arith.constant 0 : index
    %c0_62 = arith.constant 0 : index
    %162 = vector.load %arg16[%c0_60, %c0_61, %c0_62] : memref<2x8x32xf32, #tpu.memory_space<vmem>>, vector<2x8x32xf32>
    tpu.vector_store %arg16[%c0_60, %c0_61, %c0_62], %161 {strides = array<i32>} : memref<2x8x32xf32, #tpu.memory_space<vmem>>, vector<2x8x32xf32>,
    %c1_i32 = arith.constant 1 : i32
    %163 = arith.cmpi eq, %arg1, %c1_i32 : i32
    %164 = arith.extui %163 : i1 to i32
    %c0_i32_63 = arith.constant 0 : i32
    %165 = arith.cmpi ne, %164, %c0_i32_63 : i32
    scf.if %165 {
      %c0_64 = arith.constant 0 : index
      %c0_65 = arith.constant 0 : index
      %c0_66 = arith.constant 0 : index
      %166 = vector.load %arg16[%c0_64, %c0_65, %c0_66] : memref<2x8x32xf32, #tpu.memory_space<vmem>>, vector<2x1x32xf32>
      %c0_67 = arith.constant 0 : index
      %c0_68 = arith.constant 0 : index
      %c0_69 = arith.constant 0 : index
      %167 = vector.load %arg14[%c0_67, %c0_68, %c0_69] : memref<2x1x32xf32, #tpu.memory_space<vmem>>, vector<2x1x32xf32>
      tpu.vector_store %arg14[%c0_67, %c0_68, %c0_69], %166 {strides = array<i32>} : memref<2x1x32xf32, #tpu.memory_space<vmem>>, vector<2x1x32xf32>,
      %168 = vector.shape_cast %166 : vector<2x1x32xf32> to vector<2x32xf32>
      %169 = arith.truncf %168 : vector<2x32xf32> to vector<2x32xbf16>
      %c0_70 = arith.constant 0 : index
      %c0_71 = arith.constant 0 : index
      %170 = vector.load %arg12[%c0_70, %c0_71] : memref<32x32xbf16, #tpu.memory_space<vmem>>, vector<32x32xbf16>
      %cst_72 = arith.constant dense<0.000000e+00> : vector<2x32xf32>
      %171 = tpu.matmul %169, %170, %cst_72 {dimension_numbers = #tpu.dot_dimension_numbers<[1], [0], [0], [1], [0, 0, 1, 1], [], []>} : vector<2x32xbf16>, vector<32x32xbf16>, vector<2x32xf32> -> vector<2x32xf32>
      %c0_73 = arith.constant 0 : index
      %c0_74 = arith.constant 0 : index
      %172 = vector.load %arg13[%c0_73, %c0_74] : memref<1x32xf32, #tpu.memory_space<vmem>>, vector<1x32xf32>
      %173 = vector.broadcast %172 : vector<1x32xf32> to vector<2x32xf32>
      %174 = arith.addf %171, %173 : vector<2x32xf32>
      %175 = math.tanh %174 : vector<2x32xf32>
      %176 = vector.shape_cast %175 : vector<2x32xf32> to vector<2x1x32xf32>
      %c0_75 = arith.constant 0 : index
      %c0_76 = arith.constant 0 : index
      %c0_77 = arith.constant 0 : index
      %177 = vector.load %arg15[%c0_75, %c0_76, %c0_77] : memref<2x1x32xf32, #tpu.memory_space<vmem>>, vector<2x1x32xf32>
      tpu.vector_store %arg15[%c0_75, %c0_76, %c0_77], %176 {strides = array<i32>} : memref<2x1x32xf32, #tpu.memory_space<vmem>>, vector<2x1x32xf32>,
    } else {
    }
    return
  }
  func.func @transform_0(%arg0: i32, %arg1: i32) -> (i32, i32, i32) {
    %c0_i32 = arith.constant 0 : i32
    %c0_i32_0 = arith.constant 0 : i32
    %c0_i32_1 = arith.constant 0 : i32
    return %arg0, %c0_i32, %c0_i32_0 : i32, i32, i32
  }
  func.func @transform_1(%arg0: i32, %arg1: i32) -> (i32, i32, i32) {
    %c0_i32 = arith.constant 0 : i32
    %c0_i32_0 = arith.constant 0 : i32
    %c0_i32_1 = arith.constant 0 : i32
    return %arg0, %c0_i32, %c0_i32_0 : i32, i32, i32
  }
  func.func @transform_2(%arg0: i32, %arg1: i32) -> (i32, i32) {
    %c0_i32 = arith.constant 0 : i32
    %c0_i32_0 = arith.constant 0 : i32
    %c0_i32_1 = arith.constant 0 : i32
    return %c0_i32, %c0_i32_0 : i32, i32
  }
  func.func @transform_3(%arg0: i32, %arg1: i32) -> (i32, i32, i32) {
    %c0_i32 = arith.constant 0 : i32
    %c0_i32_0 = arith.constant 0 : i32
    %c0_i32_1 = arith.constant 0 : i32
    return %arg1, %c0_i32, %c0_i32_0 : i32, i32, i32
  }
  func.func @transform_4(%arg0: i32, %arg1: i32) -> (i32, i32, i32) {
    %c0_i32 = arith.constant 0 : i32
    %c0_i32_0 = arith.constant 0 : i32
    %c0_i32_1 = arith.constant 0 : i32
    return %arg1, %c0_i32, %c0_i32_0 : i32, i32, i32
  }
  func.func @transform_5(%arg0: i32, %arg1: i32) -> (i32, i32, i32) {
    %c0_i32 = arith.constant 0 : i32
    %c0_i32_0 = arith.constant 0 : i32
    %c0_i32_1 = arith.constant 0 : i32
    return %arg1, %c0_i32, %c0_i32_0 : i32, i32, i32
  }
  func.func @transform_6(%arg0: i32, %arg1: i32) -> (i32, i32, i32) {
    %c0_i32 = arith.constant 0 : i32
    %c0_i32_0 = arith.constant 0 : i32
    %c0_i32_1 = arith.constant 0 : i32
    return %arg1, %c0_i32, %c0_i32_0 : i32, i32, i32
  }
  func.func @transform_7(%arg0: i32, %arg1: i32) -> (i32, i32, i32) {
    %c0_i32 = arith.constant 0 : i32
    %c0_i32_0 = arith.constant 0 : i32
    %c0_i32_1 = arith.constant 0 : i32
    return %arg1, %c0_i32, %c0_i32_0 : i32, i32, i32
  }
  func.func @transform_8(%arg0: i32, %arg1: i32) -> (i32, i32, i32) {
    %c0_i32 = arith.constant 0 : i32
    %c0_i32_0 = arith.constant 0 : i32
    %c0_i32_1 = arith.constant 0 : i32
    return %arg1, %c0_i32, %c0_i32_0 : i32, i32, i32
  }
  func.func @transform_9(%arg0: i32, %arg1: i32) -> (i32, i32, i32) {
    %c0_i32 = arith.constant 0 : i32
    %c0_i32_0 = arith.constant 0 : i32
    %c0_i32_1 = arith.constant 0 : i32
    return %arg1, %c0_i32, %c0_i32_0 : i32, i32, i32
  }
  func.func @transform_10(%arg0: i32, %arg1: i32) -> (i32, i32) {
    %c0_i32 = arith.constant 0 : i32
    %c0_i32_0 = arith.constant 0 : i32
    %c0_i32_1 = arith.constant 0 : i32
    return %c0_i32, %c0_i32_0 : i32, i32
  }
  func.func @transform_11(%arg0: i32, %arg1: i32) -> (i32, i32) {
    %c0_i32 = arith.constant 0 : i32
    %c0_i32_0 = arith.constant 0 : i32
    %c0_i32_1 = arith.constant 0 : i32
    return %c0_i32, %c0_i32_0 : i32, i32
  }
  func.func @transform_12(%arg0: i32, %arg1: i32) -> (i32, i32, i32) {
    %c0_i32 = arith.constant 0 : i32
    %c0_i32_0 = arith.constant 0 : i32
    %c0_i32_1 = arith.constant 0 : i32
    return %arg0, %c0_i32, %c0_i32_0 : i32, i32, i32
  }
  func.func @transform_13(%arg0: i32, %arg1: i32) -> (i32, i32, i32) {
    %c0_i32 = arith.constant 0 : i32
    %c0_i32_0 = arith.constant 0 : i32
    %c0_i32_1 = arith.constant 0 : i32
    return %arg0, %c0_i32, %c0_i32_0 : i32, i32, i32
  }
}

</mosaic_0001>

<bundles_post_ra>
// kernel: tpu_custom_call.1
= control target key start
LH: loop header
LB: loop body
LE: loop exit
PB: predicated region body
PF: predicated region fallthrough
CT: control target
= control target key end

     0   :  { %s2515_s0 = inlined_call_operand.vmem [shape: bf16[2,8,32], index: 0, kind: input, shape index: {}]   ;;  %s2516_s1 = inlined_call_operand.vmem [shape: f32[2,1,8], index: 1, kind: input, shape index: {}]   ;;  %s2517_s2 = inlined_call_operand.hbm [shape: f32[2,32], index: 2, kind: input, shape index: {}]   ;;  %s2518_s3 = inlined_call_operand.vmem [shape: bf16[2,32,32], index: 3, kind: input, shape index: {}]   ;;  %s2519_s4 = inlined_call_operand.vmem [shape: bf16[2,32,32], index: 4, kind: input, shape index: {}]   ;;  %s2520_s5 = inlined_call_operand.vmem [shape: bf16[2,32,32], index: 5, kind: input, shape index: {}]   ;;  %s2521_s6 = inlined_call_operand.hbm [shape: bf16[2,32,32], index: 6, kind: input, shape index: {}]   ;;  %s2522_s7 = inlined_call_operand.hbm [shape: bf16[2,32,64], index: 7, kind: input, shape index: {}]   ;;  %s2523_s8 = inlined_call_operand.vmem [shape: bf16[2,64,32], index: 8, kind: input, shape index: {}]   ;;  %s2524_s9 = inlined_call_operand.vmem [shape: f32[2,10,64], index: 9, kind: input, shape index: {}]   ;;  %s2525_s10 = inlined_call_operand.vmem [shape: bf16[32,32], index: 10, kind: input, shape index: {}]   ;;  %s2526_s11 = inlined_call_operand.vmem [shape: f32[1,32], index: 11, kind: input, shape index: {}]   ;;  %s2527_s12 = inlined_call_operand.hbm [shape: f32[2,1,32], index: 12, kind: output, shape index: {0}]   ;;  %s2528_s13 = inlined_call_operand.hbm [shape: f32[2,1,32], index: 13, kind: output, shape index: {1}]  }
   0x1   :  { %2532 = sst [smem:[#allocation19_spill]] %s2517_s2 }
   0x2   :  { %2533 = sst [smem:[#allocation20_spill]] %s2521_s6 }
   0x3   :  { %2534 = sst [smem:[#allocation21_spill]] %s2525_s10 }
   0x4   :  { %2535 = sst [smem:[#allocation22_spill]] %s2526_s11 }
   0x5   :  { %2536 = sst [smem:[#allocation23_spill]] %s2527_s12 }
   0x6   :  { %2537 = sst [smem:[#allocation24_spill]] %s2528_s13 }
   0x7   :  { %19 = vsyncpa [#allocation5], 0 }
   0x8   :  { %20 = vsyncpa [#allocation8], 0 }
   0x9   :  { %22 = vsyncpa [#allocation8 + $0x1], 0 }
   0xa   :  { %23 = vsyncpa [#allocation6], 0 }
   0xb   :  { %24 = vsyncpa [#allocation12], 0  ;;  %s2220_s25 = smov 0   ;;  %s2222_s26 = smov 0  }
   0xc   :  { %s2224_s27 = smov 0   ;;  %s2226_s28 = smov 0  }
   0xd   :  { %s2228_s29 = smov 0   ;;  %s2230_s30 = smov 0  }
   0xe LB: > { %2538 = sst [smem:[#allocation17_spill]] %s2134_s29  ;;  %s39_s14 = sadd.s32 1, %s2134_s29  ;;  %s2138_s30 = sphi %s2230_s30, %s30_s30   ;;  %s2134_s29 = sphi %s2228_s29, %s2552_s29   ;;  %s2130_s28 = sphi %s2226_s28, %s2551_s28   ;;  %s2126_s27 = sphi %s2224_s27, %s2555_s27   ;;  %s2122_s26 = sphi %s2222_s26, %s2554_s26   ;;  %s2118_s25 = sphi %s2220_s25, %s2553_s25  }
   0xf   : > { %s200_s15 = sadd.s32 1, %s2126_s27  ;;  %p40_p0 = scmp.ge.s32.totalorder %s39_s14, 2 }
  0x10   : > { %p207_p1 = scmp.ne.s32.totalorder %s2126_s27, %s2122_s26  ;;  %p208_p2 = scmp.eq.s32.totalorder %s2138_s30, 0 }
  0x11   : > { %s2557_s14 = smov (%p40_p0, %s39_s14), 0  ;;  %p1823_p4 = scmp.lt.s32.totalorder %s2138_s30, 2 }
  0x12   : > { %2539 = sst [smem:[#allocation18_spill]] %s2557_s14  ;;  %p2257_p3 = por %p208_p2, %p207_p1 }
  0x13   : > { %s197_s17 = ssub.s32 %s2134_s29, %s2557_s14  ;;  %s468_s18 = sand.u32 1, %s2138_s30  }
  0x14   : > { %p198_p5 = scmp.eq.s32.totalorder %s197_s17, 0  ;;  %s470_s19 = sand.u32 1, %s2126_s27  }
  0x15   : > { %s1767_s20 = sshll.u32 %s2134_s29, 4  ;;  %s1656_s22 = sshll.u32 %s470_s19, 4 }
  0x16   : > { %s2268_s21 = scalar_select %p198_p5, %s2126_s27, %s200_s15  }
  0x17   : > { %s2541_s6 = sld [smem:[#allocation20_spill]]  ;;  %s472_s11 = scalar_lea.vmem [#allocation7], %s1656_s22 }
  0x18   : > { %s480_s10 = sshll.u32 %s472_s11, 4  ;;  %p2277_p6 = pnand %p1823_p4, %p2257_p3  ;;  %s481_s10 = int_to_ptr.vmem [resolvable:$true] %s480_s10 }
  0x19   : > { %s469_s17 = scalar_lea.sflag [#allocation8], %s468_s18  ;;  %s2140_s19 = smov 64  }
  0x1a   : > { %s2141_s23 = smov 4   ;;  %s494_s14 = scalar_lea.vmem [#allocation9], %s1656_s22 }
  0x1b   : > { %s502_s11 = sshll.u32 %s494_s14, 4  ;;  %s2287_s16 = sadd.s32 4294967295, %s2138_s30   ;;  %s503_s11 = int_to_ptr.vmem [resolvable:$true] %s502_s11 }
  0x1c   : > { %p213_p7 = scmp.ne.s32.totalorder %s2122_s26, %s2118_s25  ;;  %p214_p8 = scmp.eq.s32.totalorder %s2287_s16, 0 }
  0x1d   : > { %s477_s13 = scalar_lea.hbm %s2541_s6, %s1767_s20  ;;  %s499_s6 = scalar_lea.hbm %s2522_s7, %s1767_s20 }
  0x1e   : > { %s478_s12 = sshll.u32 %s477_s13, 4  ;;  %s500_s29 = sshll.u32 %s499_s6, 4  ;;  %s479_s12 = int_to_ptr.hbm [resolvable:$true] %s478_s12  ;;  %s501_s29 = int_to_ptr.hbm [resolvable:$true] %s500_s29 }
  0x1f   : > { %1818 = dma.hbm_to_vmem [thread:$0]  (!%p2277_p6), %s479_s12, 256, %s481_s10, %s469_s17, %s2140_s19, %s2140_s19, %s2141_s23  }
  0x20   : > { %p1651_p9 = scmp.ge.s32.totalorder %s2138_s30, 1  ;;  %p396_p10 = scmp.lt.s32.totalorder %s2138_s30, 3 }
  0x21   : > { %p2296_p11 = por %p214_p8, %p213_p7  ;;  %s2544_s2 = sld [smem:[#allocation19_spill]] }
  0x22   : > { %p397_p12 = pnand %p1651_p9, %p396_p10  ;;  %s2142_s18 = smov [#allocation4]  }
  0x23   : > { %s427_s20 = sshll.u32 %s2142_s18, 4  ;;  %s428_s20 = int_to_ptr.vmem [resolvable:$true] %s427_s20 }
  0x24   : > { %p1811_p13 = pneg %p397_p12  ;;  %530 = sbr.rel (%p397_p12) target bundleno = 2390 (0x956), region = 68 }
  0x25   : > { %1821 = dma.hbm_to_vmem [thread:$0]  (!%p2277_p6), %s501_s29, 256, %s503_s11, %s469_s17, %s2140_s19, %s2140_s19, %s2141_s23  }
  0x26   : > { %p1812_p0 = pnand %p1811_p13, %p214_p8 }
  0x27   : > { %s425_s6 = sshll.u32 %s2544_s2, 4  ;;  %s426_s6 = int_to_ptr.hbm [resolvable:$true] %s425_s6 }
  0x28   : > { %1814 = dma.hbm_to_vmem [thread:$0]  (!%p1812_p0), %s426_s6, 32, %s428_s20, [#allocation5]  }
  0x29   : > { %2101 = dma.done.wait (%p214_p8), [#allocation5], 32  }
  0x2a   : > { %2103 = vsyncadd (%p214_p8), [#allocation5], 4294967264  ;;  %s537_s25 = sand.u32 1, %s2287_s16   ;;  %s539_s22 = sand.u32 1, %s2122_s26  }
  0x2b   : > { %s2313_s13 = sshll.u32 %s539_s22, 4  ;;  %s538_s24 = scalar_lea.sflag [#allocation8], %s537_s25 }
  0x2c   : > { %2105 = dma.done.wait (%p2296_p11), %s538_s24, 512  }
  0x2d   : > { %2107 = vsyncadd (%p2296_p11), %s538_s24, 4294966784  ;;  %p640_p1 = scmp.lt.s32.totalorder %s2130_s28, 1  ;;  %s551_s23 = scalar_lea.vmem [#allocation9], %s2313_s13 }
  0x2e   : > { %p1676_p2 = scmp.ne.s32.totalorder %s2130_s28, 0 }
  0x2f   : > { %s641_s29 = scalar_select %p640_p1, %s2130_s28, 1 }
  0x30   : > { %671 = sbr.rel (%p1676_p2) target bundleno = 333 (0x14d), region = 84 }
  0x31   : > { %s1769_s15 = sshll.u32 %s641_s29, 4  ;;  %s1772_s17 = sshll.u32 %s641_s29, 5 }
  0x32   : > { %s2325_s11 = scalar_lea.vmem %s2518_s3, %s1769_s15  ;;  %s2330_s18 = scalar_lea.vmem %s2519_s4, %s1769_s15 }
  0x33   : > { %s2335_s25 = scalar_lea.vmem %s2520_s5, %s1769_s15  ;;  %s2340_s12 = scalar_lea.vmem %s2523_s8, %s1772_s17 }
  0x34   : > { %s2345_s19 = scalar_lea.vmem %s2524_s9, %s1769_s15 }
  0x35   : > { %v1792_v0 = vld [vmem:[%s2515_s0] sm:$0xff]   ;;  %vm678_vm0 = vcmask 261120   ;;  %v2143_v5 = vmov 32.0   ;;  %v1887_v36 = vld [vmem:[#allocation4] ss:$0 sm:$0xff] }
  0x36   : > { %v1793_v1 = vunpack.c.l.bf16 %v1792_v0  ;;  %v1794_v3 = vunpack.c.h.bf16 %v1792_v0  ;;  %1889 = vrcp.f32 %v2143_v5  ;;  %v1888_v39 = vld [vmem:[#allocation4 + $0x1] ss:$0 sm:$0xff] }
  0x38   : > { %v679_v2 = vsel %vm678_vm0, %v1793_v1, 0.0  ;;  %v682_v4 = vsel %vm678_vm0, %v1794_v3, 0.0 }
  0x39   : > { %680 = vadd.xlane.f32.xlu0 %v679_v2 }
  0x3c   : > { %v1890_v6 = vpop.eup %1889 }
  0x3d   : > { %v686_v7 = vmul.f32 32.0, %v1890_v6  ;;  %vm690_vm1 = vweird.f32 %v1890_v6 }
  0x3f   : > { %v687_v8 = vsub.f32 1.0, %v686_v7 }
  0x41   : > { %683 = vadd.xlane.f32.xlu0 %v682_v4  ;;  %v688_v9 = vmul.f32 %v1890_v6, %v687_v8 }
  0x43   : > { %v689_v10 = vadd.f32 %v1890_v6, %v688_v9 }
  0x45   : > { %v691_v11 = vsel %vm690_vm1, %v1890_v6, %v689_v10 }
  0xac   : > { %v681_v12 = vpop.xlane.xlu0 %680 }
  0xad   : > { %v692_v13 = vmul.f32 %v691_v11, %v681_v12 }
  0xaf   : > { %v694_v14 = vsub.f32 %v1793_v1, %v692_v13 }
  0xb1   : > { %v696_v15 = vmul.f32 %v694_v14, %v694_v14 }
  0xb3   : > { %v698_v16 = vsel %vm678_vm0, %v696_v15, 0.0 }
  0xb4   : > { %699 = vadd.xlane.f32.xlu1 %v698_v16  ;;  %v684_v17 = vpop.xlane.xlu0 %683 }
  0xb5   : > { %v693_v18 = vmul.f32 %v691_v11, %v684_v17 }
  0xb7   : > { %v695_v19 = vsub.f32 %v1794_v3, %v693_v18 }
  0xb9   : > { %v697_v20 = vmul.f32 %v695_v19, %v695_v19 }
  0xbb   : > { %v701_v21 = vsel %vm678_vm0, %v697_v20, 0.0 }
  0xbc   : > { %702 = vadd.xlane.f32.xlu1 %v701_v21 }
 0x127   : > { %v700_v22 = vpop.xlane.xlu1 %699 }
 0x128   : > { %v704_v23 = vmul.f32 %v700_v22, %v691_v11 }
 0x12a   : > { %v706_v24 = vadd.f32 1e-12, %v704_v23 }
 0x12c   : > { %1891 = vrsqrt.f32 %v706_v24  ;;  %vm714_vm3 = vweird.f32 %v706_v24 }
 0x12f   : > { %v703_v25 = vpop.xlane.xlu1 %702 }
 0x130   : > { %v705_v26 = vmul.f32 %v703_v25, %v691_v11 }
 0x132   : > { %v1892_v27 = vpop.eup %1891  ;;  %v707_v28 = vadd.f32 1e-12, %v705_v26 }
 0x133   : > { %v709_v29 = vmul.f32 %v1892_v27, %v706_v24  ;;  %vm715_vm2 = vweird.f32 %v1892_v27 }
 0x134   : > { %1893 = vrsqrt.f32 %v707_v28  ;;  %vm716_vm4 = vmor %vm714_vm3, %vm715_vm2  ;;  %vm724_vm6 = vweird.f32 %v707_v28 }
 0x135   : > { %v710_v30 = vmul.f32 %v1892_v27, %v709_v29 }
 0x137   : > { %v711_v31 = vmul.f32 0.5, %v710_v30 }
 0x139   : > { %v712_v32 = vsub.f32 1.5, %v711_v31 }
 0x13a   : > { %v1894_v33 = vpop.eup %1893 }
 0x13b   : > { %v713_v34 = vmul.f32 %v1892_v27, %v712_v32  ;;  %v719_v35 = vmul.f32 %v1894_v33, %v707_v28  ;;  %vm725_vm5 = vweird.f32 %v1894_v33 }
 0x13c   : > { %vm726_vm7 = vmor %vm724_vm6, %vm725_vm5 }
 0x13d   : > { %v717_v37 = vsel %vm716_vm4, %v1892_v27, %v713_v34  ;;  %v720_v38 = vmul.f32 %v1894_v33, %v719_v35 }
 0x13e   : > { %v728_v40 = vmul.f32 %v717_v37, %v694_v14 }
 0x13f   : > { %v721_v41 = vmul.f32 0.5, %v720_v38 }
 0x140   : > { %v731_v42 = vmul.f32 %v1887_v36, %v728_v40 }
 0x141   : > { %v722_v43 = vsub.f32 1.5, %v721_v41 }
 0x142   : > { %v734_v44 = vadd.f32 %v1888_v39, %v731_v42 }
 0x143   : > { %v723_v45 = vmul.f32 %v1894_v33, %v722_v43 }
 0x144   : > { %736 = vst.msk [vmem:[#allocation2] sm:$0xff] %vm678_vm0, %v734_v44 }
 0x145   : > { %v727_v46 = vsel %vm726_vm7, %v1894_v33, %v723_v45 }
 0x146   : > { %v729_v47 = vmul.f32 %v727_v46, %v695_v19 }
 0x148   : > { %v732_v48 = vmul.f32 %v1887_v36, %v729_v47 }
 0x14a   : > { %v735_v49 = vadd.f32 %v1888_v39, %v732_v48 }
 0x14c   : > { %737 = vst.msk [vmem:[#allocation2 + $0x8] sm:$0xff] %vm678_vm0, %v735_v49 }
 0x14d PF: > { %v1777_v50 = vld [vmem:[%s2330_s18 + $0x8] sm:$0xff]  ;;  %v1776_v52 = vld [vmem:[%s2330_s18] sm:$0xff]  ;;  %vm762_vm8 = vcmask 261120   ;;  %vm856_vm9 = vcmask 130048   ;;  %s2144_s2 = smov 112   ;;  %vm895_vm10 = vcmask 64512  }
 0x14e   : > { %v1775_v51 = vld [vmem:[%s2325_s11 + $0x8] sm:$0xff]  ;;  %v1774_v53 = vld [vmem:[%s2325_s11] sm:$0xff]  ;;  %807 = vmatpush.bf16.msra.mxu1 %v1777_v50  ;;  %vm923_vm11 = vcmask 1043456   ;;  %vm961_vm12 = vcmask 125952   ;;  %s2145_s20 = smov 16   ;;  %s2545_s10 = scalar_lea.vmem [#allocation7], %s2313_s13 }
 0x14f   : > { %v2362_v54 = vld [vmem:[#allocation2] sm:$0xff]  ;;  %772 = vmatpush.bf16.msra.mxu0 %v1775_v51  ;;  %v1779_v22 = vld [vmem:[%s2335_s25 + $0x8] sm:$0xff]  ;;  %vm1104_vm13 = vcmask 257152   ;;  %vm1294_vm5 = vcmask 523264   ;;  %p1751_p3 = scmp.ne.s32.totalorder %s2130_s28, 1 }
 0x150   : > { %v2371_v57 = vld [vmem:[%s2345_s19] sm:$0xff]  ;;  %840 = vmatpush.bf16.msra.mxu2 %v1779_v22  ;;  %s2547_s22 = sld [smem:[#allocation21_spill]] (!%p1751_p3) }
 0x151   : > { %v788_v58 = vperm.slane %v2371_v57, 1  ;;  %v749_v59 = vperm.slane %v2371_v57, 0  ;;  %v1778_v23 = vld [vmem:[%s2335_s25] sm:$0xff]  ;;  %v821_v45 = vperm.slane %v2371_v57, 2  ;;  %s2546_s25 = smov %s2545_s10 }
 0x152   : > { %808 = vmatpush.bf16.msra.mxu1 %v1776_v52  ;;  %v1896_v28 = vld [vmem:[%s2516_s1 + $0x1] ss:$0 sm:$0xff]  ;;  %v1895_v32 = vld [vmem:[%s2516_s1] ss:$0 sm:$0xff] }
 0x153   : > { %v2364_v55 = vld [vmem:[#allocation2 + $0x8] sm:$0xff]  ;;  %773 = vmatpush.bf16.msra.mxu0 %v1774_v53 }
 0x154   : > { %v742_v56 = vpack.c.bf16 %v2364_v55, %v2362_v54  ;;  %841 = vmatpush.bf16.msra.mxu2 %v1778_v23 }
 0x156   : > { %1694 = vmatmul.msk.bf16.vlgmr.msra.gmra.mxu1 %vm762_vm8, %v742_v56  ;;  %1685 = vmatmul.msk.bf16.vlgmr.msra.gmra.mxu0 %vm762_vm8, %v742_v56 }
 0x157   : > { %1703 = vmatmul.msk.bf16.vlgmr.msra.gmra.mxu2 %vm762_vm8, %v742_v56 }
 0x1d3   : > { %v810_v60 = vpop.f32.mrf.mxu1  ;;  %v775_v61 = vpop.f32.mrf.mxu0 }
 0x1d4   : > { %v811_v62 = vadd.f32 %v810_v60, %v788_v58  ;;  %v776_v63 = vadd.f32 %v775_v61, %v749_v59 }
 0x1d6   : > { %v815_v0 = vpack.c.bf16 %v811_v62, %v811_v62  ;;  %v780_v1 = vmul.f32 0.25, %v776_v63 }
 0x1d8   : > { %v782_v2 = vpack.c.bf16 %v780_v1, %v780_v1  ;;  %v861_v3 = vsel %vm856_vm9, %v815_v0, 0  ;;  %v970_v4 = vunpack.c.l.b16 %v815_v0 }
 0x1d9   : > { %870 = vmatpush.bf16.xpose.msra.mxu3 %v861_v3 }
 0x1da   : > { %v971_v5 = vpack.c.b16 %v970_v4, %v970_v4  ;;  %v965_v6 = vunpack.c.l.b16 %v782_v2  ;;  %v843_v47 = vpop.f32.mrf.mxu2 }
 0x1db   : > { %v812_v7 = vpop.f32.mrf.mxu1  ;;  %v777_v8 = vpop.f32.mrf.mxu0  ;;  %v844_v50 = vadd.f32 %v843_v47, %v821_v45 }
 0x1dc   : > { %v813_v9 = vadd.f32 %v812_v7, %v788_v58  ;;  %972 = vrot.lane.b32.xlu0 %v971_v5, %s2144_s2  ;;  %v778_v10 = vadd.f32 %v777_v8, %v749_v59  ;;  %v966_v11 = vpack.c.b16 %v965_v6, %v965_v6 }
 0x1dd   : > { %v848_v56 = vpack.c.bf16 %v844_v50, %v844_v50  ;;  %v1782_v50 = vld [vmem:[%s2545_s10 + $0x8] sm:$0xff] }
 0x1de   : > { %v816_v12 = vpack.c.bf16 %v813_v9, %v813_v9  ;;  %v781_v13 = vmul.f32 0.25, %v778_v10  ;;  %967 = vrot.lane.b32.xlu1 %v966_v11, %s2144_s2 }
 0x1df   : > { %v1047_v59 = vunpack.c.l.b16 %v848_v56  ;;  %v925_v4 = vsel %vm923_vm11, %v848_v56, 0 }
 0x1e0   : > { %v999_v14 = vunpack.c.l.b16 %v816_v12  ;;  %v783_v15 = vpack.c.bf16 %v781_v13, %v781_v13  ;;  %1704 = vmatmul.msk.bf16.vlgmr.msra.gmra.mxu3 %vm856_vm9, %v782_v2  ;;  %v880_v16 = vsel %vm856_vm9, %v816_v12, 0  ;;  %934 = vmatpush.bf16.msrb.mxu1 %v925_v4 }
 0x1e1   : > { %889 = vmatpush.bf16.xpose.msrb.mxu0 %v880_v16  ;;  %v1048_v62 = vpack.c.b16 %v1047_v59, %v1047_v59 }
 0x1e2   : > { %v1000_v17 = vpack.c.b16 %v999_v14, %v999_v14  ;;  %v994_v18 = vunpack.c.l.b16 %v783_v15  ;;  %v845_v1 = vpop.f32.mrf.mxu2 }
 0x1e3   : > { %v846_v2 = vadd.f32 %v845_v1, %v821_v45 }
 0x1e4   : > { %1001 = vrot.lane.b32.xlu0 %v1000_v17, %s2144_s2  ;;  %v995_v19 = vpack.c.b16 %v994_v18, %v994_v18 }
 0x1e5   : > { %v849_v3 = vpack.c.bf16 %v846_v2, %v846_v2 }
 0x1e6   : > { %996 = vrot.lane.b32.xlu1 %v995_v19, %s2144_s2 }
 0x1e7   : > { %v944_v5 = vsel %vm923_vm11, %v849_v3, 0 }
 0x1e8   : > { %1705 = vmatmul.msk.bf16.vlgmr.msrb.gmra.mxu0 %vm856_vm9, %v783_v15  ;;  %953 = vmatpush.bf16.msrb.mxu2 %v944_v5 }
 0x24e   : > { %v973_v20 = vpop.permute.xlu0 %972 }
 0x24f   : > { %v978_v21 = vsel %vm856_vm9, %v973_v20, 0 }
 0x250   : > { %987 = vmatpush.bf16.xpose.msrb.mxu3 %v978_v21  ;;  %v968_v24 = vpop.permute.xlu1 %967 }
 0x256   : > { %v1002_v25 = vpop.permute.xlu0 %1001 }
 0x257   : > { %v1007_v26 = vsel %vm856_vm9, %v1002_v25, 0  ;;  %1708 = vmatmul.msk.bf16.vlgmr.msrb.gmra.mxu3 %vm856_vm9, %v968_v24  ;;  %v1071_v24 = vunpack.c.l.b16 %v849_v3  ;;  %v2146_v3 = vmov 32.0  }
 0x258   : > { %1016 = vmatpush.bf16.xpose.msra.mxu0 %v1007_v26  ;;  %v997_v27 = vpop.permute.xlu1 %996  ;;  %1140 = vmatpush.bf16.msra.mxu3 %v1782_v50  ;;  %v1787_v50 = vld [vmem:[%s2340_s12 + $0x10] sm:$0xff] }
 0x259   : > { %v1072_v25 = vpack.c.b16 %v1071_v24, %v1071_v24 }
 0x25f   : > { %1709 = vmatmul.msk.bf16.vlgmr.msra.gmra.mxu0 %vm856_vm9, %v997_v27 }
 0x263   : > { %v872_v29 = vpop.f32.mrf.mxu3 }
 0x264   : > { %v873_v35 = vadd.f32 %v1895_v32, %v872_v29 }
 0x265   : > { %v891_v30 = vpop.f32.mrf.mxu0 }
 0x266   : > { %v892_v31 = vadd.f32 %v1896_v28, %v891_v30  ;;  %v896_v37 = vsel %vm895_vm10, %v873_v35, -inf }
 0x268   : > { %v899_v33 = vsel %vm895_vm10, %v892_v31, -inf }
 0x269   : > { %900 = vmax.xlane.f32.xlu2 %v899_v33 }
 0x26b   : > { %v874_v34 = vpop.f32.mrf.mxu3 }
 0x26d   : > { %v893_v36 = vpop.f32.mrf.mxu0 }
 0x271   : > { %897 = vmax.xlane.f32.xlu2 %v896_v37 }
 0x2da   : > { %v989_v38 = vpop.f32.mrf.mxu3 }
 0x2db   : > { %v990_v39 = vadd.f32 %v1895_v32, %v989_v38 }
 0x2dc   : > { %v901_v40 = vpop.xlane.xlu2 %900  ;;  %v1018_v41 = vpop.f32.mrf.mxu0 }
 0x2dd   : > { %v1019_v42 = vadd.f32 %v1896_v28, %v1018_v41  ;;  %v1022_v43 = vsel %vm895_vm10, %v990_v39, -inf  ;;  %v903_v52 = vsub.f32 %v892_v31, %v901_v40 }
 0x2de   : > { %1023 = vmax.xlane.f32.xlu1 %v1022_v43 }
 0x2df   : > { %v1025_v44 = vsel %vm895_vm10, %v1019_v42, -inf  ;;  %v906_v58 = vmul.f32 1.442695, %v903_v52 }
 0x2e0   : > { %1026 = vmax.xlane.f32.xlu0 %v1025_v44 }
 0x2e2   : > { %v991_v46 = vpop.f32.mrf.mxu3 }
 0x2e4   : > { %v1020_v48 = vpop.f32.mrf.mxu0  ;;  %v898_v49 = vpop.xlane.xlu2 %897 }
 0x2e5   : > { %v902_v51 = vsub.f32 %v873_v35, %v898_v49 }
 0x2e7   : > { %v904_v53 = vmul.f32 1.442695, %v902_v51  ;;  %v1781_v51 = vld [vmem:[%s2546_s25] sm:$0xff] }
 0x2e8   : > { %1141 = vmatpush.bf16.msra.mxu3 %v1781_v51  ;;  %v1786_v51 = vld [vmem:[%s2340_s12 + $0x8] sm:$0xff] }
 0x2e9   : > { %1897 = vpow2.f32 %v904_v53 }
 0x2ea   : > { %1899 = vpow2.f32 %v906_v58  ;;  %v1113_v58 = vperm.slane %v2371_v57, 3 }
 0x2ef   : > { %v1898_v60 = vpop.eup %1897 }
 0x2f0   : > { %v908_v61 = vsel %vm895_vm10, %v1898_v60, 0.0  ;;  %v1900_v63 = vpop.eup %1899 }
 0x2f1   : > { %909 = vadd.xlane.f32.xlu2 %v908_v61  ;;  %v911_v0 = vsel %vm895_vm10, %v1900_v63, 0.0 }
 0x2f4   : > { %1049 = vrot.lane.b32.xlu0 %v1048_v62, %s2144_s2 }
 0x2f9   : > { %912 = vadd.xlane.f32.xlu2 %v911_v0 }
 0x351   : > { %v1024_v6 = vpop.xlane.xlu1 %1023 }
 0x352   : > { %v1028_v7 = vsub.f32 %v990_v39, %v1024_v6 }
 0x353   : > { %v1027_v8 = vpop.xlane.xlu0 %1026 }
 0x354   : > { %v1030_v9 = vmul.f32 1.442695, %v1028_v7  ;;  %v1029_v10 = vsub.f32 %v1019_v42, %v1027_v8 }
 0x356   : > { %1901 = vpow2.f32 %v1030_v9  ;;  %v1032_v11 = vmul.f32 1.442695, %v1029_v10 }
 0x358   : > { %1903 = vpow2.f32 %v1032_v11 }
 0x35c   : > { %v1902_v12 = vpop.eup %1901 }
 0x35d   : > { %v1034_v13 = vsel %vm895_vm10, %v1902_v12, 0.0 }
 0x35e   : > { %1035 = vadd.xlane.f32.xlu2 %v1034_v13  ;;  %v1904_v14 = vpop.eup %1903 }
 0x35f   : > { %v1037_v16 = vsel %vm895_vm10, %v1904_v14, 0.0 }
 0x364   : > { %v910_v15 = vpop.xlane.xlu2 %909 }
 0x365   : > { %1905 = vrcp.f32 %v910_v15 }
 0x366   : > { %1038 = vadd.xlane.f32.xlu2 %v1037_v16  ;;  %v1050_v26 = vpop.permute.xlu0 %1049 }
 0x367   : > { %v1055_v27 = vsel %vm923_vm11, %v1050_v26, 0 }
 0x368   : > { %1064 = vmatpush.bf16.msra.mxu1 %v1055_v27 }
 0x36b   : > { %v1906_v17 = vpop.eup %1905 }
 0x36c   : > { %v916_v18 = vmul.f32 %v1906_v17, %v1898_v60  ;;  %v913_v19 = vpop.xlane.xlu2 %912 }
 0x36d   : > { %1907 = vrcp.f32 %v913_v19 }
 0x36e   : > { %v918_v20 = vpack.c.bf16 %v916_v18, %v916_v18  ;;  %v1784_v18 = vld [vmem:[%s551_s23 + $0x8] sm:$0xff] }
 0x36f   : > { %1234 = vmatpush.bf16.msrb.mxu0 %v1784_v18 }
 0x370   : > { %1706 = vmatmul.msk.bf16.vlgmr.msrb.gmra.mxu1 %vm895_vm10, %v918_v20 }
 0x373   : > { %v1908_v21 = vpop.eup %1907 }
 0x374   : > { %v917_v22 = vmul.f32 %v1908_v21, %v1900_v63  ;;  %v1783_v21 = vld [vmem:[%s551_s23] sm:$0xff]  ;;  %s2548_s23 = sld [smem:[#allocation22_spill]] (!%p1751_p3) }
 0x375   : > { %1235 = vmatpush.bf16.msrb.mxu0 %v1783_v21 }
 0x376   : > { %v919_v23 = vpack.c.bf16 %v917_v22, %v917_v22 }
 0x378   : > { %1707 = vmatmul.msk.bf16.vlgmr.msrb.gmra.mxu2 %vm895_vm10, %v919_v23 }
 0x37e   : > { %1073 = vrot.lane.b32.xlu2 %v1072_v25, %s2144_s2 }
 0x3d1   : > { %v1036_v28 = vpop.xlane.xlu2 %1035 }
 0x3d2   : > { %1909 = vrcp.f32 %v1036_v28 }
 0x3d8   : > { %v1910_v29 = vpop.eup %1909 }
 0x3d9   : > { %v1042_v30 = vmul.f32 %v1910_v29, %v1902_v12  ;;  %v1039_v31 = vpop.xlane.xlu2 %1038 }
 0x3da   : > { %1911 = vrcp.f32 %v1039_v31 }
 0x3db   : > { %v1044_v32 = vpack.c.bf16 %v1042_v30, %v1042_v30  ;;  %1913 = vrcp.f32 %v2146_v3 }
 0x3dd   : > { %1710 = vmatmul.msk.bf16.vlgmr.msra.gmra.mxu1 %vm895_vm10, %v1044_v32 }
 0x3e0   : > { %v1912_v33 = vpop.eup %1911 }
 0x3e1   : > { %v1043_v34 = vmul.f32 %v1912_v33, %v1904_v14  ;;  %v1074_v35 = vpop.permute.xlu2 %1073  ;;  %v1914_v4 = vpop.eup %1913 }
 0x3e2   : > { %v1079_v36 = vsel %vm923_vm11, %v1074_v35, 0  ;;  %v1157_v5 = vmul.f32 32.0, %v1914_v4  ;;  %vm1161_vm14 = vweird.f32 %v1914_v4 }
 0x3e3   : > { %v1045_v37 = vpack.c.bf16 %v1043_v34, %v1043_v34  ;;  %1088 = vmatpush.bf16.msra.mxu2 %v1079_v36 }
 0x3e4   : > { %v1158_v6 = vsub.f32 1.0, %v1157_v5 }
 0x3e6   : > { %1711 = vmatmul.msk.bf16.vlgmr.msra.gmra.mxu2 %vm895_vm10, %v1045_v37  ;;  %v1159_v7 = vmul.f32 %v1914_v4, %v1158_v6 }
 0x3e8   : > { %v1160_v8 = vadd.f32 %v1914_v4, %v1159_v7 }
 0x3ed   : > { %v936_v38 = vpop.f32.mrf.mxu1 }
 0x3ee   : > { %v959_v39 = vpack.c.bf16 %v936_v38, %v936_v38  ;;  %v1201_v38 = vperm.slane %v2371_v57, 4 }
 0x3f0   : > { %962 = vst.msk [vmem:[#allocation3] sm:$0xf] %vm961_vm12, %v959_v39 }
 0x3f5   : > { %v938_v40 = vpop.f32.mrf.mxu1 }
 0x3fb   : > { %v955_v41 = vpop.f32.mrf.mxu2 }
 0x3fc   : > { %v960_v42 = vpack.c.bf16 %v955_v41, %v955_v41 }
 0x3fe   : > { %963 = vst.msk [vmem:[#allocation3 + $0x4] sm:$0xf] %vm961_vm12, %v960_v42  ;;  %v1204_v42 = vperm.slane %v2371_v57, 5 }
 0x403   : > { %v957_v43 = vpop.f32.mrf.mxu2 }
 0x45a   : > { %v1066_v44 = vpop.f32.mrf.mxu1 }
 0x45b   : > { %v1094_v45 = vpack.c.bf16 %v1066_v44, %v1066_v44 }
 0x45d   : > { %1098 = vrot.lane.b32.xlu1 %v1094_v45, %s2145_s20 }
 0x462   : > { %v1068_v46 = vpop.f32.mrf.mxu1 }
 0x469   : > { %v1090_v47 = vpop.f32.mrf.mxu2 }
 0x46a   : > { %v1095_v48 = vpack.c.bf16 %v1090_v47, %v1090_v47 }
 0x46c   : > { %1100 = vrot.lane.b32.xlu2 %v1095_v48, %s2145_s20 }
 0x471   : > { %v1092_v49 = vpop.f32.mrf.mxu2 }
 0x472   : > { %v1788_v49 = vld [vmem:[%s2340_s12 + $0x18] sm:$0xff] }
 0x473   : > { %1302 = vmatpush.bf16.msrb.mxu1 %v1788_v49 }
 0x477   : > { %1303 = vmatpush.bf16.msrb.mxu1 %v1787_v50 }
 0x47b   : > { %1304 = vmatpush.bf16.msrb.mxu1 %v1786_v51 }
 0x4c6   : > { %v1101_v52 = vpop.permute.xlu2 %1100 }
 0x4c7   : > { %1106 = vst.msk [vmem:[#allocation3 + $0x4] sm:$0xf] %vm1104_vm13, %v1101_v52  ;;  %v1212_v52 = vperm.slane %v2371_v57, 6 }
 0x4cf   : > { %v1099_v53 = vpop.permute.xlu1 %1098 }
 0x4d0   : > { %1105 = vst.msk [vmem:[#allocation3] sm:$0xf] %vm1104_vm13, %v1099_v53  ;;  %v1785_v53 = vld [vmem:[%s2340_s12] sm:$0xff] }
 0x4d1   : > { %1305 = vmatpush.bf16.msrb.mxu1 %v1785_v53 }
 0x4d7   : > { %v1780_v56 = vld [vmem:[#allocation3] sm:$0xff] }
 0x4d8   : > { %1724 = vmatmul.msk.bf16.vlgmr.msra.gmra.mxu3 %vm762_vm8, %v1780_v56 }
 0x55b   : > { %v1143_v59 = vpop.f32.mrf.mxu3 }
 0x55c   : > { %v1144_v60 = vadd.f32 %v1143_v59, %v1113_v58 }
 0x55e   : > { %v1148_v61 = vadd.f32 %v1144_v60, %v2362_v54  ;;  %v2427_v54 = vsel %vm1161_vm14, %v1914_v4, %v1160_v8 }
 0x560   : > { %v1150_v62 = vsel %vm762_vm8, %v1148_v61, 0.0 }
 0x561   : > { %1151 = vadd.xlane.f32.xlu0 %v1150_v62 }
 0x563   : > { %v1145_v63 = vpop.f32.mrf.mxu3 }
 0x564   : > { %v1146_v0 = vadd.f32 %v1145_v63, %v1113_v58 }
 0x566   : > { %v1149_v1 = vadd.f32 %v1146_v0, %v2364_v55 }
 0x568   : > { %v1153_v2 = vsel %vm762_vm8, %v1149_v1, 0.0 }
 0x569   : > { %1154 = vadd.xlane.f32.xlu2 %v1153_v2 }
 0x5d4   : > { %v1152_v9 = vpop.xlane.xlu0 %1151 }
 0x5d5   : > { %v1163_v10 = vmul.f32 %v2427_v54, %v1152_v9 }
 0x5d7   : > { %v1165_v11 = vsub.f32 %v1148_v61, %v1163_v10 }
 0x5d9   : > { %v1167_v55 = vmul.f32 %v1165_v11, %v1165_v11 }
 0x5db   : > { %v1169_v12 = vsel %vm762_vm8, %v1167_v55, 0.0 }
 0x5dc   : > { %v1155_v13 = vpop.xlane.xlu2 %1154  ;;  %1170 = vadd.xlane.f32.xlu1 %v1169_v12 }
 0x5dd   : > { %v1164_v14 = vmul.f32 %v2427_v54, %v1155_v13 }
 0x5df   : > { %v1166_v15 = vsub.f32 %v1149_v1, %v1164_v14 }
 0x5e1   : > { %v1168_v16 = vmul.f32 %v1166_v15, %v1166_v15 }
 0x5e3   : > { %v1172_v17 = vsel %vm762_vm8, %v1168_v16, 0.0 }
 0x5e4   : > { %1173 = vadd.xlane.f32.xlu0 %v1172_v17 }
 0x64f   : > { %v1171_v19 = vpop.xlane.xlu1 %1170 }
 0x650   : > { %v1175_v20 = vmul.f32 %v1171_v19, %v2427_v54 }
 0x652   : > { %v1177_v22 = vadd.f32 1e-12, %v1175_v20 }
 0x654   : > { %1915 = vrsqrt.f32 %v1177_v22  ;;  %vm1185_vm0 = vweird.f32 %v1177_v22 }
 0x657   : > { %v1174_v23 = vpop.xlane.xlu0 %1173 }
 0x658   : > { %v1176_v24 = vmul.f32 %v1174_v23, %v2427_v54 }
 0x65a   : > { %v1916_v25 = vpop.eup %1915  ;;  %v1178_v26 = vadd.f32 1e-12, %v1176_v24 }
 0x65b   : > { %v1180_v27 = vmul.f32 %v1916_v25, %v1177_v22  ;;  %vm1186_vm15 = vweird.f32 %v1916_v25 }
 0x65c   : > { %1917 = vrsqrt.f32 %v1178_v26  ;;  %vm1187_vm1 = vmor %vm1185_vm0, %vm1186_vm15  ;;  %vm1195_vm3 = vweird.f32 %v1178_v26 }
 0x65d   : > { %v1181_v28 = vmul.f32 %v1916_v25, %v1180_v27 }
 0x65f   : > { %v1182_v29 = vmul.f32 0.5, %v1181_v28 }
 0x661   : > { %v1183_v30 = vsub.f32 1.5, %v1182_v29 }
 0x662   : > { %v1918_v31 = vpop.eup %1917 }
 0x663   : > { %v1184_v32 = vmul.f32 %v1916_v25, %v1183_v30  ;;  %v1190_v33 = vmul.f32 %v1918_v31, %v1178_v26  ;;  %vm1196_vm2 = vweird.f32 %v1918_v31 }
 0x664   : > { %vm1197_vm4 = vmor %vm1195_vm3, %vm1196_vm2 }
 0x665   : > { %v1191_v34 = vmul.f32 %v1918_v31, %v1190_v33  ;;  %v1188_v35 = vsel %vm1187_vm1, %v1916_v25, %v1184_v32 }
 0x666   : > { %v1199_v39 = vmul.f32 %v1188_v35, %v1165_v11 }
 0x667   : > { %v1192_v36 = vmul.f32 0.5, %v1191_v34 }
 0x668   : > { %v1202_v43 = vmul.f32 %v1201_v38, %v1199_v39 }
 0x669   : > { %v1193_v37 = vsub.f32 1.5, %v1192_v36 }
 0x66a   : > { %v1205_v46 = vadd.f32 %v1204_v42, %v1202_v43  ;;  %v739_v43 = vld [vmem:[%s2345_s19 + $0x8] sm:$0x3] }
 0x66b   : > { %v1194_v40 = vmul.f32 %v1918_v31, %v1193_v37  ;;  %v1361_v51 = vperm.slane %v739_v43, 1 }
 0x66d   : > { %v1198_v41 = vsel %vm1197_vm4, %v1918_v31, %v1194_v40 }
 0x66e   : > { %v1200_v44 = vmul.f32 %v1198_v41, %v1166_v15  ;;  %v1269_v15 = vperm.slane %v2371_v57, 7 }
 0x670   : > { %v1203_v45 = vmul.f32 %v1201_v38, %v1200_v44 }
 0x672   : > { %v1206_v47 = vadd.f32 %v1204_v42, %v1203_v45 }
 0x674   : > { %v1207_v48 = vpack.c.bf16 %v1206_v47, %v1205_v46 }
 0x676   : > { %1733 = vmatmul.msk.bf16.vlgmr.msrb.gmra.mxu0 %vm762_vm8, %v1207_v48  ;;  %v1358_v48 = vperm.slane %v739_v43, 0 }
 0x6f3   : > { %v1237_v56 = vpop.f32.mrf.mxu0 }
 0x6f4   : > { %v1238_v58 = vadd.f32 %v1237_v56, %v1212_v52 }
 0x6f6   : > { %v1242_v59 = vmul.f32 %v1238_v58, %v1238_v58 }
 0x6f8   : > { %v1244_v60 = vmul.f32 %v1242_v59, %v1238_v58 }
 0x6fa   : > { %v1246_v61 = vmul.f32 0.044715, %v1244_v60 }
 0x6fb   : > { %v1239_v62 = vpop.f32.mrf.mxu0 }
 0x6fc   : > { %v1248_v63 = vadd.f32 %v1246_v61, %v1238_v58  ;;  %v1240_v0 = vadd.f32 %v1239_v62, %v1212_v52 }
 0x6fe   : > { %v1250_v1 = vmul.f32 0.7978846, %v1248_v63  ;;  %v1243_v2 = vmul.f32 %v1240_v0, %v1240_v0 }
 0x700   : > { %v1245_v3 = vmul.f32 %v1243_v2, %v1240_v0  ;;  %1919 = vtanh.f32 %v1250_v1 }
 0x702   : > { %v1247_v4 = vmul.f32 0.044715, %v1245_v3 }
 0x704   : > { %v1249_v5 = vadd.f32 %v1247_v4, %v1240_v0 }
 0x706   : > { %v1251_v6 = vmul.f32 0.7978846, %v1249_v5  ;;  %v1920_v7 = vpop.eup %1919 }
 0x707   : > { %v1254_v8 = vadd.f32 1.0, %v1920_v7 }
 0x708   : > { %1921 = vtanh.f32 %v1251_v6 }
 0x709   : > { %v1256_v10 = vmul.f32 0.5, %v1254_v8 }
 0x70b   : > { %v1258_v12 = vmul.f32 %v1256_v10, %v1238_v58 }
 0x70e   : > { %v1922_v9 = vpop.eup %1921 }
 0x70f   : > { %v1255_v11 = vadd.f32 1.0, %v1922_v9 }
 0x711   : > { %v1257_v55 = vmul.f32 0.5, %v1255_v11 }
 0x713   : > { %v1259_v13 = vmul.f32 %v1257_v55, %v1240_v0 }
 0x715   : > { %v1260_v14 = vpack.c.bf16 %v1259_v13, %v1258_v12 }
 0x717   : > { %1750 = vmatmul.msk.bf16.vlgmr.msrb.gmra.mxu1 %vm1294_vm5, %v1260_v14 }
 0x794   : > { %v1307_v16 = vpop.f32.mrf.mxu1 }
 0x795   : > { %v1308_v17 = vadd.f32 %v1307_v16, %v1269_v15 }
 0x797   : > { %v1312_v18 = vadd.f32 %v1308_v17, %v1205_v46 }
 0x799   : > { %v1314_v19 = vsel %vm762_vm8, %v1312_v18, 0.0 }
 0x79a   : > { %1315 = vadd.xlane.f32.xlu2 %v1314_v19 }
 0x79c   : > { %v1309_v20 = vpop.f32.mrf.mxu1 }
 0x79d   : > { %v1310_v21 = vadd.f32 %v1309_v20, %v1269_v15 }
 0x79f   : > { %v1313_v22 = vadd.f32 %v1310_v21, %v1206_v47 }
 0x7a1   : > { %v1317_v23 = vsel %vm762_vm8, %v1313_v22, 0.0 }
 0x7a2   : > { %1318 = vadd.xlane.f32.xlu1 %v1317_v23 }
 0x80d   : > { %v1316_v24 = vpop.xlane.xlu2 %1315 }
 0x80e   : > { %v1320_v25 = vmul.f32 %v1316_v24, %v2427_v54 }
 0x810   : > { %v1322_v26 = vsub.f32 %v1312_v18, %v1320_v25 }
 0x812   : > { %v1324_v27 = vmul.f32 %v1322_v26, %v1322_v26 }
 0x814   : > { %v1326_v28 = vsel %vm762_vm8, %v1324_v27, 0.0 }
 0x815   : > { %v1319_v57 = vpop.xlane.xlu1 %1318  ;;  %1327 = vadd.xlane.f32.xlu0 %v1326_v28 }
 0x816   : > { %v1321_v29 = vmul.f32 %v1319_v57, %v2427_v54 }
 0x818   : > { %v1323_v30 = vsub.f32 %v1313_v22, %v1321_v29 }
 0x81a   : > { %v1325_v31 = vmul.f32 %v1323_v30, %v1323_v30 }
 0x81c   : > { %v1329_v32 = vsel %vm762_vm8, %v1325_v31, 0.0 }
 0x81d   : > { %1330 = vadd.xlane.f32.xlu2 %v1329_v32 }
 0x888   : > { %v1328_v33 = vpop.xlane.xlu0 %1327 }
 0x889   : > { %v1332_v34 = vmul.f32 %v1328_v33, %v2427_v54 }
 0x88b   : > { %v1334_v35 = vadd.f32 1e-12, %v1332_v34 }
 0x88d   : > { %1923 = vrsqrt.f32 %v1334_v35  ;;  %vm1342_vm7 = vweird.f32 %v1334_v35 }
 0x890   : > { %v1331_v36 = vpop.xlane.xlu2 %1330 }
 0x891   : > { %v1333_v37 = vmul.f32 %v1331_v36, %v2427_v54 }
 0x893   : > { %v1924_v38 = vpop.eup %1923  ;;  %v1335_v39 = vadd.f32 1e-12, %v1333_v37 }
 0x894   : > { %v1337_v40 = vmul.f32 %v1924_v38, %v1334_v35  ;;  %vm1343_vm6 = vweird.f32 %v1924_v38 }
 0x895   : > { %1925 = vrsqrt.f32 %v1335_v39  ;;  %vm1344_vm9 = vmor %vm1342_vm7, %vm1343_vm6  ;;  %vm1352_vm11 = vweird.f32 %v1335_v39 }
 0x896   : > { %v1338_v41 = vmul.f32 %v1924_v38, %v1337_v40 }
 0x898   : > { %v1339_v42 = vmul.f32 0.5, %v1338_v41 }
 0x89a   : > { %v1340_v44 = vsub.f32 1.5, %v1339_v42 }
 0x89b   : > { %v1926_v45 = vpop.eup %1925 }
 0x89c   : > { %v1341_v46 = vmul.f32 %v1924_v38, %v1340_v44  ;;  %v1347_v47 = vmul.f32 %v1926_v45, %v1335_v39  ;;  %vm1353_vm10 = vweird.f32 %v1926_v45 }
 0x89d   : > { %vm1354_vm12 = vmor %vm1352_vm11, %vm1353_vm10 }
 0x89e   : > { %v1345_v49 = vsel %vm1344_vm9, %v1924_v38, %v1341_v46  ;;  %v1348_v50 = vmul.f32 %v1926_v45, %v1347_v47 }
 0x89f   : > { %v1356_v52 = vmul.f32 %v1345_v49, %v1322_v26 }
 0x8a0   : > { %v1349_v54 = vmul.f32 0.5, %v1348_v50 }
 0x8a1   : > { %v1359_v53 = vmul.f32 %v1358_v48, %v1356_v52 }
 0x8a2   : > { %v1350_v56 = vsub.f32 1.5, %v1349_v54 }
 0x8a3   : > { %v1362_v58 = vadd.f32 %v1361_v51, %v1359_v53 }
 0x8a4   : > { %v1351_v59 = vmul.f32 %v1926_v45, %v1350_v56 }
 0x8a5   : > { %1364 = vst.msk [vmem:[#allocation2] sm:$0xff] %vm762_vm8, %v1362_v58 }
 0x8a6   : > { %v1355_v60 = vsel %vm1354_vm12, %v1926_v45, %v1351_v59 }
 0x8a7   : > { %v1357_v61 = vmul.f32 %v1355_v60, %v1323_v30 }
 0x8a9   : > { %v1360_v62 = vmul.f32 %v1358_v48, %v1357_v61  ;;  %1369 = sbr.rel (%p1751_p3) target bundleno = 2376 (0x948), region = 88 }
 0x8ab   : > { %v1363_v63 = vadd.f32 %v1361_v51, %v1360_v62 }
 0x8ad   : > { %1365 = vst.msk [vmem:[#allocation2 + $0x8] sm:$0xff] %vm762_vm8, %v1363_v63 }
 0x8ae   : > { %v1790_v0 = vld [vmem:[%s2547_s22 + $0x8] sm:$0xff]  ;;  %v1370_v1 = vld [vmem:[#allocation2] sm:$0x1]  ;;  %vm1372_vm13 = vcmask 253952   ;;  %vm1390_vm14 = vcmask 1041409  }
 0x8af   : > { %1373 = vst.msk [vmem:[#allocation10] sm:$0x1] %vm1372_vm13, %v1370_v1  ;;  %v1375_v3 = vpack.c.bf16 %v1370_v1, %v1370_v1  ;;  %1414 = vmatpush.bf16.msra.mxu0 %v1790_v0  ;;  %v1789_v4 = vld [vmem:[%s2547_s22] sm:$0xff] }
 0x8b0   : > { %v1927_v11 = vld [vmem:[%s2548_s23] ss:$0 sm:$0xff] }
 0x8b1   : > { %v1387_v6 = vunpack.c.l.b16 %v1375_v3 }
 0x8b3   : > { %1415 = vmatpush.bf16.msra.mxu0 %v1789_v4 }
 0x8b4   : > { %v1371_v2 = vld [vmem:[#allocation2 + $0x8] sm:$0x1] }
 0x8b5   : > { %1374 = vst.msk [vmem:[#allocation10 + $0x1] sm:$0x1] %vm1372_vm13, %v1371_v2  ;;  %v1376_v5 = vpack.c.bf16 %v1371_v2, %v1371_v2 }
 0x8b7   : > { %v1388_v7 = vunpack.c.l.b16 %v1376_v5 }
 0x8b9   : > { %v1389_v8 = vrot.slane %v1388_v7, 7 }
 0x8bb   : > { %v1391_v9 = vsel %vm1390_vm14, %v1389_v8, %v1387_v6 }
 0x8bc   : > { %v1392_v10 = vpack.c.b16 %v1391_v9, %v1391_v9 }
 0x8be   : > { %1760 = vmatmul.msk.bf16.vlgmr.msra.gmra.mxu0 %vm762_vm8, %v1392_v10 }
 0x93b   : > { %v1417_v55 = vpop.f32.mrf.mxu0 }
 0x93c   : > { %v1418_v12 = vadd.f32 %v1927_v11, %v1417_v55 }
 0x93e   : > { %1928 = vtanh.f32 %v1418_v12 }
 0x943   : > { %v1419_v13 = vpop.f32.mrf.mxu0 }
 0x944   : > { %v1929_v14 = vpop.eup %1928 }
 0x945   : > { %v1423_v15 = vrot.slane %v1929_v14, 1  ;;  %1425 = vst.msk [vmem:[#allocation11] sm:$0x1] %vm1372_vm13, %v1929_v14 }
 0x947   : > { %1426 = vst.msk [vmem:[#allocation11 + $0x1] sm:$0x1] %vm1372_vm13, %v1423_v15 }
 0x948 PF: > { %p1825_p4 = scmp.eq.s32.totalorder %s2287_s16, 1  ;;  %s2549_s2 = sld [smem:[#allocation23_spill]] }
 0x949   : > { %s2147_s17 = smov [#allocation10]   ;;  %s2148_s18 = smov 1  }
 0x94a   : > { %s1434_s11 = sshll.u32 %s2147_s17, 4  ;;  %s2550_s13 = sld [smem:[#allocation24_spill]]  ;;  %s1435_s11 = int_to_ptr.vmem [resolvable:$true] %s1434_s11 }
 0x94b   : > { %s2149_s24 = smov [#allocation11]  }
 0x94c   : > { %s1450_s29 = sshll.u32 %s2149_s24, 4  ;;  %s1451_s29 = int_to_ptr.vmem [resolvable:$true] %s1450_s29 }
 0x94e   : > { %s1436_s15 = sshll.u32 %s2549_s2, 4  ;;  %s1437_s15 = int_to_ptr.hbm [resolvable:$true] %s1436_s15 }
 0x94f   : > { %1804 = dma.vmem_to_hbm [thread:$0]  (%p1825_p4), %s1435_s11, 32, %s1437_s15, [#allocation6], %s2145_s20, %s2145_s20, %s2148_s18  }
 0x950   : > { %s1452_s12 = sshll.u32 %s2550_s13, 4  ;;  %s1453_s12 = int_to_ptr.hbm [resolvable:$true] %s1452_s12 }
 0x951   : > { %1806 = dma.vmem_to_hbm [thread:$0]  (%p1825_p4), %s1451_s29, 32, %s1453_s12, [#allocation12], %s2145_s20, %s2145_s20, %s2148_s18  }
 0x952   : > { %2109 = dma.done.wait (%p1825_p4), [#allocation6], 32  }
 0x953   : > { %2111 = vsyncadd (%p1825_p4), [#allocation6], 4294967264 }
 0x954   : > { %2113 = dma.done.wait (%p1825_p4), [#allocation12], 32  }
 0x955   : > { %2115 = vsyncadd (%p1825_p4), [#allocation12], 4294967264 }
 0x956 PF: > { %s30_s30 = sadd.s32 1, %s2138_s30   ;;  %s2551_s28 = sld [smem:[#allocation17_spill]] }
 0x957   : > { %p27_p5 = scmp.ge.s32.totalorder %s30_s30, 4   ;;  %s2552_s29 = sld [smem:[#allocation18_spill]] }
 0x958   : > { %s2553_s25 = smov %s2122_s26  ;;  %s2554_s26 = smov %s2126_s27 }
 0x959   : > { %s2555_s27 = smov %s2268_s21  ;;  %29 = sbr.rel (!%p27_p5) target bundleno = 14 (0xe), region = 160 }
 0x95e   :  { %1474 = vsyncpa [#allocation5], 1 }
 0x95f   :  { %1476 = vsyncpa [#allocation5 + $0x1], 1 }
 0x960   :  { %1477 = vsyncpa [#allocation8], 1 }
 0x961   :  { %1479 = vsyncpa [#allocation8 + $0x1], 1 }
 0x962   :  { %1480 = vsyncpa [#allocation6], 1 }
 0x963   :  { %1482 = vsyncpa [#allocation6 + $0x1], 1 }
 0x964   :  { %1483 = vsyncpa [#allocation12], 1 }

</bundles_post_ra>
